<compile_context>
chip_gen: v5e
topology: v5e:2x2
jax: 0.10.0
libtpu: 0.0.40
codegen_flags: <defaults>
</compile_context>

<pallas_src>
import jax
import jax.numpy as jnp
from jax.experimental import pallas as pl
from jax.experimental.pallas import tpu as pltpu


def _round_up(n, m):
    return ((n + m - 1) // m) * m


def _pick_tile(B):
    """Batch tile TB and padded batch size.

    - Small batches: one lane-aligned tile (single grid step).
    - Larger batches: TB is a multiple of 256 (fills v6e/v7x MXU rows), capped
      at 512, and the grid keeps >= 2 steps so both v7x TensorCores are used.
    """
    b = _round_up(max(B, 1), 128)
    if b <= 256:
        return b, b
    tb = 512 if b >= 2048 else 256
    return tb, _round_up(max(B, 1), tb)


def _critic_kernel(xa_ref, w1_ref, b1_ref, w2_ref, b2_ref, w3t_ref, b3_ref, o_ref):
    # Layer 1: (TB, sd+ad) @ (sd+ad, H1P); bf16 MXU, f32 accumulate.
    h1 = jnp.dot(xa_ref[...].astype(jnp.bfloat16), w1_ref[...],
                 preferred_element_type=jnp.float32)
    # Fused bias + ReLU + bf16 downcast (single bf16 activation copy).
    h1 = jnp.maximum(h1 + b1_ref[...], 0.0).astype(jnp.bfloat16)

    # Layer 2: (TB, H1P) @ (H1P, H2P); bf16 MXU, f32 accumulate.
    h2 = jnp.dot(h1, w2_ref[...], preferred_element_type=jnp.float32)
    h2 = jnp.maximum(h2 + b2_ref[...], 0.0).astype(jnp.bfloat16)

    # Layer 3: contract H2P of (1, H2P) with H2P of (TB, H2P) -> (1, TB).
    # No h2.T materialization; Mosaic feeds the transposed operand to the MXU.
    q = jax.lax.dot_general(w3t_ref[...], h2,
                            dimension_numbers=(((1,), (1,)), ((), ())),
                            preferred_element_type=jnp.float32)
    o_ref[...] = (q + b3_ref[0, 0]).astype(o_ref.dtype)  # b3 is an SMEM scalar


@jax.jit
def critic_forward(x, action, params):
    w1, b1, w2, b2, w3t, b3 = params
    B, sd = x.shape
    ad = action.shape[1]
    in1 = sd + ad
    H1P = w1.shape[1]
    H2P = w2.shape[1]

    # One cheap XLA concat so layer 1 is a single merged K=sd+ad matmul.
    xa = jnp.concatenate([x, action], axis=1)

    TB, B_pad = _pick_tile(B)
    if B_pad != B:
        xa = jnp.pad(xa, ((0, B_pad - B), (0, 0)))

    flops = 2 * B_pad * (in1 * H1P + H1P * H2P + H2P)
    bytes_accessed = (
        B_pad * in1 * 4 + B_pad * 4
        + sum(int(p.size) * p.dtype.itemsize for p in (w1, b1, w2, b2, w3t, b3))
    )

    out = pl.pallas_call(
        _critic_kernel,
        out_shape=jax.ShapeDtypeStruct((1, B_pad), jnp.float32),
        grid=(B_pad // TB,),
        in_specs=[
            pl.BlockSpec((TB, in1), lambda i: (i, 0)),          # [x||a] tile (f32)
            pl.BlockSpec((in1, H1P), lambda i: (0, 0)),         # w1   (bf16)
            pl.BlockSpec((1, H1P), lambda i: (0, 0)),           # b1   (f32)
            pl.BlockSpec((H1P, H2P), lambda i: (0, 0)),         # w2   (bf16)
            pl.BlockSpec((1, H2P), lambda i: (0, 0)),           # b2   (f32)
            pl.BlockSpec((1, H2P), lambda i: (0, 0)),           # w3^T (bf16)
            pl.BlockSpec(memory_space=pltpu.MemorySpace.SMEM),  # b3 scalar
        ],
        out_specs=pl.BlockSpec((1, TB), lambda i: (0, i)),      # lane-dense q row
        compiler_params=pltpu.CompilerParams(
            dimension_semantics=("parallel",)),
        cost_estimate=pl.CostEstimate(
            flops=flops, transcendentals=0, bytes_accessed=bytes_accessed),
    )(xa, w1, b1, w2, b2, w3t, b3)

    return out[0, :B].reshape(B, 1)


def init_params(key, state_dim=8, action_dim=2, hidden_dim=(400, 300)):
    """PyTorch-style uniform(+-1/sqrt(fan_in)) init, stored in kernel layout.

    Weights are (in_features, out_features) (transposed vs. torch), padded
    with zeros to lane-aligned hidden sizes, and cast to bfloat16. Biases are
    float32. w3 is stored as a bf16 (1, H2P) row (w3^T); b3 is a (1, 1) f32
    scalar. Zero padding + ReLU keeps the math identical to the unpadded net.
    """
    h1, h2 = hidden_dim
    H1P = _round_up(h1, 128)   # 400 -> 512
    H2P = _round_up(h2, 128)   # 300 -> 384
    in1 = state_dim + action_dim
    k = jax.random.split(key, 6)

    def u(kk, shape, fan_in):
        bound = 1.0 / float(fan_in) ** 0.5
        return jax.random.uniform(kk, shape, jnp.float32, -bound, bound)

    w1 = u(k[0], (in1, h1), in1)
    b1 = u(k[1], (h1,), in1)
    w2 = u(k[2], (h1, h2), h1)
    b2 = u(k[3], (h2,), h1)
    w3 = u(k[4], (h2, 1), h2)
    b3 = u(k[5], (1,), h2)

    w1p = jnp.zeros((in1, H1P), jnp.float32).at[:, :h1].set(w1).astype(jnp.bfloat16)
    b1p = jnp.zeros((1, H1P), jnp.float32).at[0, :h1].set(b1)
    w2p = jnp.zeros((H1P, H2P), jnp.float32).at[:h1, :h2].set(w2).astype(jnp.bfloat16)
    b2p = jnp.zeros((1, H2P), jnp.float32).at[0, :h2].set(b2)
    w3t = jnp.zeros((1, H2P), jnp.float32).at[0, :h2].set(w3[:, 0]).astype(jnp.bfloat16)
    b3p = b3.reshape(1, 1)
    return (w1p, b1p, w2p, b2p, w3t, b3p)


def critic_reference(x, action, params):
    """Pure-JAX reference mirroring the kernel's precision (bf16 weights &
    activations, f32 accumulation) for a tight correctness check."""
    w1, b1, w2, b2, w3t, b3 = params
    xa = jnp.concatenate([x, action], axis=1).astype(jnp.bfloat16)
    h1 = jnp.dot(xa, w1, preferred_element_type=jnp.float32) + b1
    h1 = jnp.maximum(h1, 0.0).astype(jnp.bfloat16)
    h2 = jnp.dot(h1, w2, preferred_element_type=jnp.float32) + b2
    h2 = jnp.maximum(h2, 0.0).astype(jnp.bfloat16)
    q = jnp.dot(h2, w3t.T, preferred_element_type=jnp.float32)
    return q + b3[0, 0]


if __name__ == "__main__":
    B, state_dim, action_dim = 4, 8, 2
    hidden_dim = (400, 300)  # module defaults

    key = jax.random.PRNGKey(0)
    kx, ka, kp = jax.random.split(key, 3)
    x = jax.random.normal(kx, (B, state_dim), jnp.float32)
    action = jax.random.normal(ka, (B, action_dim), jnp.float32)
    params = init_params(kp, state_dim, action_dim, hidden_dim)

    q = jax.block_until_ready(critic_forward(x, action, params))
    q_ref = critic_reference(x, action, params)

    assert q.shape == (B, 1), q.shape
    assert jnp.allclose(q, q_ref, atol=1e-3, rtol=1e-3), (q, q_ref)

    print("KERNEL_OK")
</pallas_src>

<mosaic_0001>
module attributes {stable_mosaic.version = 11 : i64} {
  func.func @_critic_kernel(%arg0: i32, %arg1: memref<128x10xf32, #tpu.memory_space<vmem>>, %arg2: memref<10x512xbf16, #tpu.memory_space<vmem>>, %arg3: memref<1x512xf32, #tpu.memory_space<vmem>>, %arg4: memref<512x384xbf16, #tpu.memory_space<vmem>>, %arg5: memref<1x384xf32, #tpu.memory_space<vmem>>, %arg6: memref<1x384xbf16, #tpu.memory_space<vmem>>, %arg7: memref<1x1xf32, #tpu.memory_space<smem>>, %arg8: memref<1x128xf32, #tpu.memory_space<vmem>>) attributes {dimension_semantics = [#tpu.dimension_semantics<parallel>], iteration_bounds = array<i64: 1>, scalar_prefetch = 0 : i64, scratch_operands = 0 : i64, tpu.core_type = #tpu.core_type<tc>, window_params = [{transform_indices = @transform_0, window_bounds = array<i64: 128, 10>}, {pipeline_mode = #tpu.pipeline_mode<synchronous>, transform_indices = @transform_1, window_bounds = array<i64: 10, 512>}, {pipeline_mode = #tpu.pipeline_mode<synchronous>, transform_indices = @transform_2, window_bounds = array<i64: 1, 512>}, {pipeline_mode = #tpu.pipeline_mode<synchronous>, transform_indices = @transform_3, window_bounds = array<i64: 512, 384>}, {pipeline_mode = #tpu.pipeline_mode<synchronous>, transform_indices = @transform_4, window_bounds = array<i64: 1, 384>}, {pipeline_mode = #tpu.pipeline_mode<synchronous>, transform_indices = @transform_5, window_bounds = array<i64: 1, 384>}, {transform_indices = @transform_6, window_bounds = array<i64: 1, 1>}, {transform_indices = @transform_7, window_bounds = array<i64: 1, 128>}]} {
    %c0 = arith.constant 0 : index
    %c0_0 = arith.constant 0 : index
    %0 = vector.load %arg1[%c0, %c0_0] : memref<128x10xf32, #tpu.memory_space<vmem>>, vector<128x10xf32>
    %1 = arith.truncf %0 : vector<128x10xf32> to vector<128x10xbf16>
    %c0_1 = arith.constant 0 : index
    %c0_2 = arith.constant 0 : index
    %2 = vector.load %arg2[%c0_1, %c0_2] : memref<10x512xbf16, #tpu.memory_space<vmem>>, vector<10x512xbf16>
    %cst = arith.constant dense<0.000000e+00> : vector<128x512xf32>
    %3 = tpu.matmul %1, %2, %cst {dimension_numbers = #tpu.dot_dimension_numbers<[1], [0], [0], [1], [0, 0, 1, 1], [], []>} : vector<128x10xbf16>, vector<10x512xbf16>, vector<128x512xf32> -> vector<128x512xf32>
    %c0_3 = arith.constant 0 : index
    %c0_4 = arith.constant 0 : index
    %4 = vector.load %arg3[%c0_3, %c0_4] : memref<1x512xf32, #tpu.memory_space<vmem>>, vector<1x512xf32>
    %5 = vector.broadcast %4 : vector<1x512xf32> to vector<128x512xf32>
    %6 = arith.addf %3, %5 : vector<128x512xf32>
    %cst_5 = arith.constant 0.000000e+00 : f32
    %7 = vector.broadcast %cst_5 : f32 to vector<128x512xf32>
    %8 = arith.maximumf %6, %7 : vector<128x512xf32>
    %9 = arith.truncf %8 : vector<128x512xf32> to vector<128x512xbf16>
    %c0_6 = arith.constant 0 : index
    %c0_7 = arith.constant 0 : index
    %10 = vector.load %arg4[%c0_6, %c0_7] : memref<512x384xbf16, #tpu.memory_space<vmem>>, vector<512x384xbf16>
    %cst_8 = arith.constant dense<0.000000e+00> : vector<128x384xf32>
    %11 = tpu.matmul %9, %10, %cst_8 {dimension_numbers = #tpu.dot_dimension_numbers<[1], [0], [0], [1], [0, 0, 1, 1], [], []>} : vector<128x512xbf16>, vector<512x384xbf16>, vector<128x384xf32> -> vector<128x384xf32>
    %c0_9 = arith.constant 0 : index
    %c0_10 = arith.constant 0 : index
    %12 = vector.load %arg5[%c0_9, %c0_10] : memref<1x384xf32, #tpu.memory_space<vmem>>, vector<1x384xf32>
    %13 = vector.broadcast %12 : vector<1x384xf32> to vector<128x384xf32>
    %14 = arith.addf %11, %13 : vector<128x384xf32>
    %cst_11 = arith.constant 0.000000e+00 : f32
    %15 = vector.broadcast %cst_11 : f32 to vector<128x384xf32>
    %16 = arith.maximumf %14, %15 : vector<128x384xf32>
    %17 = arith.truncf %16 : vector<128x384xf32> to vector<128x384xbf16>
    %c0_12 = arith.constant 0 : index
    %c0_13 = arith.constant 0 : index
    %18 = vector.load %arg6[%c0_12, %c0_13] : memref<1x384xbf16, #tpu.memory_space<vmem>>, vector<1x384xbf16>
    %cst_14 = arith.constant dense<0.000000e+00> : vector<1x128xf32>
    %19 = tpu.matmul %18, %17, %cst_14 {dimension_numbers = #tpu.dot_dimension_numbers<[1], [1], [0], [0], [0, 0, 1, 0], [], []>} : vector<1x384xbf16>, vector<128x384xbf16>, vector<1x128xf32> -> vector<1x128xf32>
    %c0_15 = arith.constant 0 : index
    %c0_16 = arith.constant 0 : index
    %20 = memref.load %arg7[%c0_15, %c0_16] : memref<1x1xf32, #tpu.memory_space<smem>>
    %21 = vector.broadcast %20 : f32 to vector<1x128xf32>
    %22 = arith.addf %19, %21 : vector<1x128xf32>
    %c0_17 = arith.constant 0 : index
    %c0_18 = arith.constant 0 : index
    %23 = vector.load %arg8[%c0_17, %c0_18] : memref<1x128xf32, #tpu.memory_space<vmem>>, vector<1x128xf32>
    tpu.vector_store %arg8[%c0_17, %c0_18], %22 {strides = array<i32>} : memref<1x128xf32, #tpu.memory_space<vmem>>, vector<1x128xf32>,
    return
  }
  func.func @transform_0(%arg0: i32) -> (i32, i32) {
    %c0_i32 = arith.constant 0 : i32
    %c0_i32_0 = arith.constant 0 : i32
    return %arg0, %c0_i32 : i32, i32
  }
  func.func @transform_1(%arg0: i32) -> (i32, i32) {
    %c0_i32 = arith.constant 0 : i32
    %c0_i32_0 = arith.constant 0 : i32
    %c0_i32_1 = arith.constant 0 : i32
    return %c0_i32, %c0_i32_0 : i32, i32
  }
  func.func @transform_2(%arg0: i32) -> (i32, i32) {
    %c0_i32 = arith.constant 0 : i32
    %c0_i32_0 = arith.constant 0 : i32
    %c0_i32_1 = arith.constant 0 : i32
    return %c0_i32, %c0_i32_0 : i32, i32
  }
  func.func @transform_3(%arg0: i32) -> (i32, i32) {
    %c0_i32 = arith.constant 0 : i32
    %c0_i32_0 = arith.constant 0 : i32
    %c0_i32_1 = arith.constant 0 : i32
    return %c0_i32, %c0_i32_0 : i32, i32
  }
  func.func @transform_4(%arg0: i32) -> (i32, i32) {
    %c0_i32 = arith.constant 0 : i32
    %c0_i32_0 = arith.constant 0 : i32
    %c0_i32_1 = arith.constant 0 : i32
    return %c0_i32, %c0_i32_0 : i32, i32
  }
  func.func @transform_5(%arg0: i32) -> (i32, i32) {
    %c0_i32 = arith.constant 0 : i32
    %c0_i32_0 = arith.constant 0 : i32
    %c0_i32_1 = arith.constant 0 : i32
    return %c0_i32, %c0_i32_0 : i32, i32
  }
  func.func @transform_6(%arg0: i32) -> (i32, i32) {
    %c0_i32 = arith.constant 0 : i32
    %c0_i32_0 = arith.constant 0 : i32
    %c0_i32_1 = arith.constant 0 : i32
    return %c0_i32, %c0_i32_0 : i32, i32
  }
  func.func @transform_7(%arg0: i32) -> (i32, i32) {
    %c0_i32 = arith.constant 0 : i32
    %c0_i32_0 = arith.constant 0 : i32
    return %c0_i32, %arg0 : i32, i32
  }
}

</mosaic_0001>

<bundles_post_ra>
// kernel: critic_forward.1
= control target key start
LH: loop header
LB: loop body
LE: loop exit
PB: predicated region body
PF: predicated region fallthrough
CT: control target
= control target key end

     0   :  { %13 = vsyncpa [#allocation4], 0  ;;  %s2353_s27 = smov [#allocation3]   ;;  %s2354_s29 = smov 192   ;;  %s2900_s0 = inlined_call_operand.vmem [shape: f32[128,10], index: 0, kind: input, shape index: {}]   ;;  %s2901_s1 = inlined_call_operand.vmem [shape: bf16[10,512], index: 1, kind: input, shape index: {}]   ;;  %s2902_s2 = inlined_call_operand.vmem [shape: f32[1,512], index: 2, kind: input, shape index: {}]   ;;  %s2903_s3 = inlined_call_operand.hbm [shape: bf16[512,384], index: 3, kind: input, shape index: {}]   ;;  %s2904_s4 = inlined_call_operand.vmem [shape: f32[1,384], index: 4, kind: input, shape index: {}]   ;;  %s2905_s5 = inlined_call_operand.vmem [shape: bf16[1,384], index: 5, kind: input, shape index: {}]   ;;  %s2906_s6 = inlined_call_operand.<no memory space> [shape: f32[1,1], index: 6, kind: input, shape index: {}]   ;;  %s2907_s7 = inlined_call_operand.vmem [shape: f32[1,128], index: 7, kind: output, shape index: {}]  }
   0x1   :  { %s24_s26 = sshll.u32 %s2903_s3, 4  ;;  %s26_s28 = sshll.u32 %s2353_s27, 4  ;;  %s25_s26 = int_to_ptr.hbm [resolvable:$true] %s24_s26  ;;  %s27_s28 = int_to_ptr.vmem [resolvable:$true] %s26_s28 }
   0x2   :  { %s2355_s30 = smov 12  }
   0x3   :  { %32 = dma.hbm_to_vmem [thread:$0]  %s25_s26, 12288, %s27_s28, [#allocation4], %s2354_s29, %s2354_s29, %s2355_s30  }
   0x4   :  { %2351 = dma.done.wait [#allocation4], 12288  }
   0x5   :  { %2352 = vsyncadd [#allocation4], 4294955008  ;;  %vm123_vm0 = vcmask 1044480   ;;  %v1794_v0 = vld [vmem:[%s2901_s1] sm:$0xf]  ;;  %v45_v14 = vld [vmem:[%s2900_s0 + $0x8] sm:$0xff] }
   0x6   :  { %v2226_v1 = vld [vmem:[%s2901_s1 + $0xc] sm:$0x10]  ;;  %v2224_v2 = vld [vmem:[%s2901_s1 + $0x4] sm:$0xf]  ;;  %v1796_v4 = vld [vmem:[%s2901_s1 + $0x10] sm:$0x10] }
   0x7   :  { %v1795_v3 = vor.u32 %v2226_v1, %v1794_v0  ;;  %v1802_v5 = vld [vmem:[%s2901_s1 + $0x8] sm:$0xf]  ;;  %v2227_v6 = vld [vmem:[%s2901_s1 + $0x14] sm:$0x10]  ;;  %v1799_v7 = vor.u32 %v2224_v2, %v1796_v4  ;;  %v2225_v9 = vld [vmem:[%s2901_s1 + $0xc] sm:$0xf] }
   0x8   :  { %v1803_v8 = vor.u32 %v2227_v6, %v1802_v5  ;;  %v1804_v10 = vld [vmem:[%s2901_s1 + $0x18] sm:$0x10]  ;;  %v44_v11 = vld [vmem:[%s2900_s0] sm:$0xff]  ;;  %vm98_vm1 = vcmask 80896   ;;  %v46_v19 = vld [vmem:[%s2900_s0 + $0x10] sm:$0xff] }
   0x9   :  { %v125_v12 = vsel %vm123_vm0, %v1795_v3, 0  ;;  %v1807_v13 = vor.u32 %v2225_v9, %v1804_v10  ;;  %v128_v15 = vsel %vm123_vm0, %v1799_v7, 0  ;;  %v60_v17 = vpack.c.bf16 %v45_v14, %v44_v11  ;;  %v47_v20 = vld [vmem:[%s2900_s0 + $0x18] sm:$0xff]  ;;  %v48_v22 = vld [vmem:[%s2900_s0 + $0x20] sm:$0xff]  ;;  %v49_v23 = vld [vmem:[%s2900_s0 + $0x28] sm:$0xff] }
   0xa   :  { %143 = vmatpush.bf16.msra.mxu0 %v125_v12  ;;  %v131_v16 = vsel %vm123_vm0, %v1803_v8, 0  ;;  %192 = vmatpush.bf16.msra.mxu1 %v128_v15  ;;  %v61_v21 = vpack.c.bf16 %v47_v20, %v46_v19  ;;  %v62_v24 = vpack.c.bf16 %v49_v23, %v48_v22  ;;  %v50_v25 = vld [vmem:[%s2900_s0 + $0x30] sm:$0xff]  ;;  %v51_v26 = vld [vmem:[%s2900_s0 + $0x38] sm:$0xff]  ;;  %v52_v40 = vld [vmem:[%s2900_s0 + $0x40] sm:$0xff] }
   0xb   :  { %241 = vmatpush.bf16.msra.mxu2 %v131_v16  ;;  %v134_v18 = vsel %vm123_vm0, %v1807_v13, 0  ;;  %v63_v27 = vpack.c.bf16 %v51_v26, %v50_v25  ;;  %v2118_v28 = vld [vmem:[#allocation3 + $0x228] sm:$0xf]  ;;  %v2298_v29 = vld [vmem:[#allocation3 + $0x230] sm:$0xf0]  ;;  %v53_v41 = vld [vmem:[%s2900_s0 + $0x48] sm:$0xff] }
   0xc   :  { %290 = vmatpush.bf16.msra.mxu3 %v134_v18  ;;  %v1926_v30 = vld [vmem:[#allocation3 + $0xa8] sm:$0xf]  ;;  %v2119_v31 = vor.u32 %v2298_v29, %v2118_v28  ;;  %v2250_v32 = vld [vmem:[#allocation3 + $0xb0] sm:$0xf0]  ;;  %v64_v42 = vpack.c.bf16 %v53_v41, %v52_v40  ;;  %v2106_v43 = vld [vmem:[#allocation3 + $0x210] sm:$0xf] }
   0xd   :  { %1808 = vmatmul.msk.bf16.vlgmr.msra.gmra.mxu0 %vm98_vm1, %v60_v17  ;;  %1816 = vmatmul.msk.bf16.vlgmr.msra.gmra.mxu1 %vm98_vm1, %v60_v17  ;;  %v2214_v33 = vld [vmem:[#allocation3 + $0x2e8] sm:$0xf]  ;;  %v2322_v34 = vld [vmem:[#allocation3 + $0x2f0] sm:$0xf0]  ;;  %v1927_v35 = vor.u32 %v2250_v32, %v1926_v30  ;;  %v2295_v44 = vld [vmem:[#allocation3 + $0x218] sm:$0xf0] }
   0xe   :  { %1824 = vmatmul.msk.bf16.vlgmr.msra.gmra.mxu2 %vm98_vm1, %v60_v17  ;;  %v2215_v36 = vor.u32 %v2322_v34, %v2214_v33  ;;  %v2022_v37 = vld [vmem:[#allocation3 + $0x168] sm:$0xf]  ;;  %v2274_v38 = vld [vmem:[#allocation3 + $0x170] sm:$0xf0]  ;;  %v1914_v45 = vld [vmem:[#allocation3 + $0x90] sm:$0xf]  ;;  %v2107_v46 = vor.u32 %v2295_v44, %v2106_v43 }
   0xf   :  { %1832 = vmatmul.msk.bf16.vlgmr.msra.gmra.mxu3 %vm98_vm1, %v60_v17  ;;  %1174 = vmatpush.bf16.msrb.mxu2 %v2119_v31  ;;  %v2023_v39 = vor.u32 %v2274_v38, %v2022_v37  ;;  %v2247_v47 = vld [vmem:[#allocation3 + $0x98] sm:$0xf0]  ;;  %v2202_v48 = vld [vmem:[#allocation3 + $0x2d0] sm:$0xf]  ;;  %v54_v55 = vld [vmem:[%s2900_s0 + $0x50] sm:$0xff] }
  0x10   :  { %1076 = vmatpush.bf16.msrb.mxu0 %v1927_v35  ;;  %1223 = vmatpush.bf16.msrb.mxu3 %v2215_v36  ;;  %v2319_v49 = vld [vmem:[#allocation3 + $0x2d8] sm:$0xf0]  ;;  %v1915_v50 = vor.u32 %v2247_v47, %v1914_v45  ;;  %v2010_v52 = vld [vmem:[#allocation3 + $0x150] sm:$0xf]  ;;  %v2094_v58 = vld [vmem:[#allocation3 + $0x1f8] sm:$0xf] }
  0x11   :  { %1125 = vmatpush.bf16.msrb.mxu1 %v2023_v39  ;;  %v2203_v51 = vor.u32 %v2319_v49, %v2202_v48  ;;  %v2271_v53 = vld [vmem:[#allocation3 + $0x158] sm:$0xf0]  ;;  %v55_v56 = vld [vmem:[%s2900_s0 + $0x58] sm:$0xff]  ;;  %v2292_v59 = vld [vmem:[#allocation3 + $0x200] sm:$0xf0] }
  0x12   :  { %v2011_v54 = vor.u32 %v2271_v53, %v2010_v52  ;;  %v65_v57 = vpack.c.bf16 %v55_v56, %v54_v55  ;;  %v1902_v60 = vld [vmem:[#allocation3 + $0x78] sm:$0xf]  ;;  %v2095_v61 = vor.u32 %v2292_v59, %v2094_v58  ;;  %v2244_v62 = vld [vmem:[#allocation3 + $0x80] sm:$0xf0]  ;;  %v1890_v5 = vld [vmem:[#allocation3 + $0x60] sm:$0xf] }
  0x13   :  { %1175 = vmatpush.bf16.msrb.mxu2 %v2107_v46  ;;  %v1998_v63 = vld [vmem:[#allocation3 + $0x138] sm:$0xf]  ;;  %v2268_v0 = vld [vmem:[#allocation3 + $0x140] sm:$0xf0]  ;;  %v1903_v1 = vor.u32 %v2244_v62, %v1902_v60  ;;  %v2241_v7 = vld [vmem:[#allocation3 + $0x68] sm:$0xf0] }
  0x14   :  { %1077 = vmatpush.bf16.msrb.mxu0 %v1915_v50  ;;  %1224 = vmatpush.bf16.msrb.mxu3 %v2203_v51  ;;  %v1999_v2 = vor.u32 %v2268_v0, %v1998_v63  ;;  %v2190_v3 = vld [vmem:[#allocation3 + $0x2b8] sm:$0xf]  ;;  %v2316_v4 = vld [vmem:[#allocation3 + $0x2c0] sm:$0xf0]  ;;  %v1986_v8 = vld [vmem:[#allocation3 + $0x120] sm:$0xf]  ;;  %v1891_v10 = vor.u32 %v2241_v7, %v1890_v5 }
  0x15   :  { %1126 = vmatpush.bf16.msrb.mxu1 %v2011_v54  ;;  %v2191_v6 = vor.u32 %v2316_v4, %v2190_v3  ;;  %v2265_v9 = vld [vmem:[#allocation3 + $0x128] sm:$0xf0]  ;;  %v56_v12 = vld [vmem:[%s2900_s0 + $0x60] sm:$0xff]  ;;  %v57_v13 = vld [vmem:[%s2900_s0 + $0x68] sm:$0xff] }
  0x16   :  { %v1987_v11 = vor.u32 %v2265_v9, %v1986_v8  ;;  %v66_v14 = vpack.c.bf16 %v57_v13, %v56_v12  ;;  %v1878_v15 = vld [vmem:[#allocation3 + $0x48] sm:$0xf]  ;;  %v2238_v16 = vld [vmem:[#allocation3 + $0x50] sm:$0xf0]  ;;  %v2289_v22 = vld [vmem:[#allocation3 + $0x1e8] sm:$0xf0] }
  0x17   :  { %1176 = vmatpush.bf16.msrb.mxu2 %v2095_v61  ;;  %v1974_v17 = vld [vmem:[#allocation3 + $0x108] sm:$0xf]  ;;  %v1879_v18 = vor.u32 %v2238_v16, %v1878_v15  ;;  %v2262_v19 = vld [vmem:[#allocation3 + $0x110] sm:$0xf0]  ;;  %v2178_v23 = vld [vmem:[#allocation3 + $0x2a0] sm:$0xf] }
  0x18   :  { %1078 = vmatpush.bf16.msrb.mxu0 %v1903_v1  ;;  %1225 = vmatpush.bf16.msrb.mxu3 %v2191_v6  ;;  %v1975_v20 = vor.u32 %v2262_v19, %v1974_v17  ;;  %v2313_v25 = vld [vmem:[#allocation3 + $0x2a8] sm:$0xf0]  ;;  %v2235_v28 = vld [vmem:[#allocation3 + $0x38] sm:$0xf0]  ;;  %v1962_v30 = vld [vmem:[#allocation3 + $0xf0] sm:$0xf] }
  0x19   :  { %1127 = vmatpush.bf16.msrb.mxu1 %v1999_v2  ;;  %v2179_v26 = vor.u32 %v2313_v25, %v2178_v23  ;;  %v2259_v31 = vld [vmem:[#allocation3 + $0xf8] sm:$0xf0]  ;;  %v2070_v33 = vld [vmem:[#allocation3 + $0x1c8] sm:$0xf]  ;;  %v2286_v34 = vld [vmem:[#allocation3 + $0x1d0] sm:$0xf0] }
  0x1a   :  { %v1963_v32 = vor.u32 %v2259_v31, %v1962_v30  ;;  %v2166_v35 = vld [vmem:[#allocation3 + $0x288] sm:$0xf]  ;;  %v2071_v36 = vor.u32 %v2286_v34, %v2070_v33  ;;  %v2310_v37 = vld [vmem:[#allocation3 + $0x290] sm:$0xf0]  ;;  %v1854_v39 = vld [vmem:[#allocation3 + $0x18] sm:$0xf] }
  0x1b   :  { %v2167_v38 = vor.u32 %v2310_v37, %v2166_v35  ;;  %v2232_v40 = vld [vmem:[#allocation3 + $0x20] sm:$0xf0]  ;;  %v1950_v41 = vld [vmem:[#allocation3 + $0xd8] sm:$0xf]  ;;  %v2058_v45 = vld [vmem:[#allocation3 + $0x1b0] sm:$0xf] }
  0x1c   :  { %1079 = vmatpush.bf16.msrb.mxu0 %v1891_v10  ;;  %1226 = vmatpush.bf16.msrb.mxu3 %v2179_v26  ;;  %v2256_v43 = vld [vmem:[#allocation3 + $0xe0] sm:$0xf0]  ;;  %v2283_v46 = vld [vmem:[#allocation3 + $0x1b8] sm:$0xf0]  ;;  %v2154_v48 = vld [vmem:[#allocation3 + $0x270] sm:$0xf] }
  0x1d   :  { %1809 = vmatmul.msk.bf16.gmra.mxu0 %vm98_vm1, %v61_v21  ;;  %1817 = vmatmul.msk.bf16.gmra.mxu1 %vm98_vm1, %v61_v21  ;;  %v1951_v44 = vor.u32 %v2256_v43, %v1950_v41  ;;  %v2059_v47 = vor.u32 %v2283_v46, %v2058_v45  ;;  %v2307_v49 = vld [vmem:[#allocation3 + $0x278] sm:$0xf0]  ;;  %v1842_v51 = vld [vmem:[#allocation3] sm:$0xf]  ;;  %v2229_v52 = vld [vmem:[#allocation3 + $0x8] sm:$0xf0] }
  0x1e   :  { %1825 = vmatmul.msk.bf16.gmra.mxu2 %vm98_vm1, %v61_v21  ;;  %1128 = vmatpush.bf16.msrb.mxu1 %v1987_v11  ;;  %v2155_v50 = vor.u32 %v2307_v49, %v2154_v48  ;;  %v1938_v53 = vld [vmem:[#allocation3 + $0xc0] sm:$0xf]  ;;  %v58_v54 = vld [vmem:[%s2900_s0 + $0x70] sm:$0xff]  ;;  %v59_v55 = vld [vmem:[%s2900_s0 + $0x78] sm:$0xff]  ;;  %v1843_v56 = vor.u32 %v2229_v52, %v1842_v51 }
  0x1f   :  { %1833 = vmatmul.msk.bf16.gmra.mxu3 %vm98_vm1, %v61_v21  ;;  %v2082_v21 = vld [vmem:[#allocation3 + $0x1e0] sm:$0xf]  ;;  %v2046_v59 = vld [vmem:[#allocation3 + $0x198] sm:$0xf]  ;;  %v2280_v60 = vld [vmem:[#allocation3 + $0x1a0] sm:$0xf0]  ;;  %v67_v0 = vpack.c.bf16 %v59_v55, %v58_v54 }
  0x20   :  { %1080 = vmatpush.bf16.msrb.mxu0 %v1879_v18  ;;  %1227 = vmatpush.bf16.msrb.mxu3 %v2167_v38  ;;  %v2142_v61 = vld [vmem:[#allocation3 + $0x258] sm:$0xf]  ;;  %v2047_v62 = vor.u32 %v2280_v60, %v2046_v59  ;;  %v2304_v63 = vld [vmem:[#allocation3 + $0x260] sm:$0xf0]  ;;  %v2034_v2 = vld [vmem:[#allocation3 + $0x180] sm:$0xf] }
  0x21   :  { %v2143_v1 = vor.u32 %v2304_v63, %v2142_v61  ;;  %v2277_v3 = vld [vmem:[#allocation3 + $0x188] sm:$0xf0]  ;;  %v2130_v4 = vld [vmem:[#allocation3 + $0x240] sm:$0xf]  ;;  %v72_v8 = vld [vmem:[%s2902_s2] sm:$0xf] }
  0x22   :  { %1129 = vmatpush.bf16.msrb.mxu1 %v1975_v20  ;;  %v2035_v5 = vor.u32 %v2277_v3, %v2034_v2  ;;  %v2301_v6 = vld [vmem:[#allocation3 + $0x248] sm:$0xf0]  ;;  %v2510_v10 = vperm.slane %v72_v8, 0  ;;  %v2512_v12 = vperm.slane %v72_v8, 1 }
  0x23   :  { %v2131_v7 = vor.u32 %v2301_v6, %v2130_v4 }
  0x24   :  { %1228 = vmatpush.bf16.msrb.mxu3 %v2155_v50 }
  0x26   :  { %1130 = vmatpush.bf16.msrb.mxu1 %v1963_v32 }
  0x28   :  { %1229 = vmatpush.bf16.msrb.mxu3 %v2143_v1 }
  0x2a   :  { %1131 = vmatpush.bf16.msrb.mxu1 %v1951_v44 }
  0x2c   :  { %1230 = vmatpush.bf16.msrb.mxu3 %v2131_v7 }
  0x2d   :  { %1810 = vmatmul.msk.bf16.gmra.mxu0 %vm98_vm1, %v62_v24  ;;  %1818 = vmatmul.msk.bf16.gmra.mxu1 %vm98_vm1, %v62_v24 }
  0x2e   :  { %1826 = vmatmul.msk.bf16.gmra.mxu2 %vm98_vm1, %v62_v24 }
  0x2f   :  { %1834 = vmatmul.msk.bf16.gmra.mxu3 %vm98_vm1, %v62_v24  ;;  %v2083_v24 = vor.u32 %v2289_v22, %v2082_v21  ;;  %v2517_v22 = vperm.slane %v72_v8, 2 }
  0x31   :  { %1177 = vmatpush.bf16.msrb.mxu2 %v2083_v24  ;;  %v2520_v24 = vperm.slane %v72_v8, 3 }
  0x35   :  { %1178 = vmatpush.bf16.msrb.mxu2 %v2071_v36 }
  0x39   :  { %1179 = vmatpush.bf16.msrb.mxu2 %v2059_v47 }
  0x3d   :  { %1811 = vmatmul.msk.bf16.gmra.mxu0 %vm98_vm1, %v63_v27  ;;  %1819 = vmatmul.msk.bf16.gmra.mxu1 %vm98_vm1, %v63_v27 }
  0x3e   :  { %1827 = vmatmul.msk.bf16.gmra.mxu2 %vm98_vm1, %v63_v27 }
  0x3f   :  { %1835 = vmatmul.msk.bf16.gmra.mxu3 %vm98_vm1, %v63_v27  ;;  %v1866_v27 = vld [vmem:[#allocation3 + $0x30] sm:$0xf]  ;;  %1180 = vmatpush.bf16.msrb.mxu2 %v2047_v62 }
  0x40   :  { %v1867_v29 = vor.u32 %v2235_v28, %v1866_v27 }
  0x42   :  { %1081 = vmatpush.bf16.msrb.mxu0 %v1867_v29 }
  0x43   :  { %1181 = vmatpush.bf16.msrb.mxu2 %v2035_v5 }
  0x4d   :  { %1812 = vmatmul.msk.bf16.gmra.mxu0 %vm98_vm1, %v64_v42  ;;  %1820 = vmatmul.msk.bf16.gmra.mxu1 %vm98_vm1, %v64_v42 }
  0x4e   :  { %1828 = vmatmul.msk.bf16.gmra.mxu2 %vm98_vm1, %v64_v42 }
  0x4f   :  { %1836 = vmatmul.msk.bf16.gmra.mxu3 %vm98_vm1, %v64_v42  ;;  %v1855_v42 = vor.u32 %v2232_v40, %v1854_v39 }
  0x51   :  { %1082 = vmatpush.bf16.msrb.mxu0 %v1855_v42 }
  0x55   :  { %1083 = vmatpush.bf16.msrb.mxu0 %v1843_v56 }
  0x5d   :  { %1813 = vmatmul.msk.bf16.gmra.mxu0 %vm98_vm1, %v65_v57  ;;  %1821 = vmatmul.msk.bf16.gmra.mxu1 %vm98_vm1, %v65_v57 }
  0x5e   :  { %1829 = vmatmul.msk.bf16.gmra.mxu2 %vm98_vm1, %v65_v57 }
  0x5f   :  { %1837 = vmatmul.msk.bf16.gmra.mxu3 %vm98_vm1, %v65_v57  ;;  %v2253_v57 = vld [vmem:[#allocation3 + $0xc8] sm:$0xf0] }
  0x60   :  { %v1939_v58 = vor.u32 %v2253_v57, %v1938_v53 }
  0x62   :  { %1132 = vmatpush.bf16.msrb.mxu1 %v1939_v58 }
  0x6d   :  { %1814 = vmatmul.msk.bf16.gmra.mxu0 %vm98_vm1, %v66_v14  ;;  %1822 = vmatmul.msk.bf16.gmra.mxu1 %vm98_vm1, %v66_v14 }
  0x6e   :  { %1830 = vmatmul.msk.bf16.gmra.mxu2 %vm98_vm1, %v66_v14 }
  0x6f   :  { %1838 = vmatmul.msk.bf16.gmra.mxu3 %vm98_vm1, %v66_v14 }
  0x7d   :  { %1815 = vmatmul.msk.bf16.gmra.mxu0 %vm98_vm1, %v67_v0  ;;  %1823 = vmatmul.msk.bf16.gmra.mxu1 %vm98_vm1, %v67_v0 }
  0x7e   :  { %1831 = vmatmul.msk.bf16.gmra.mxu2 %vm98_vm1, %v67_v0 }
  0x7f   :  { %1839 = vmatmul.msk.bf16.gmra.mxu3 %vm98_vm1, %v67_v0 }
  0x8a   :  { %v145_v9 = vpop.f32.mrf.mxu0  ;;  %v194_v11 = vpop.f32.mrf.mxu1 }
  0x8b   :  { %v146_v13 = vadd.f32 %v145_v9, %v2510_v10  ;;  %v195_v14 = vadd.f32 %v194_v11, %v2512_v12 }
  0x8d   :  { %v332_v18 = vmax.f32 %v146_v13, 0.0  ;;  %v333_v21 = vmax.f32 %v195_v14, 0.0 }
  0x91   :  { %v243_v15 = vpop.f32.mrf.mxu2 }
  0x92   :  { %v292_v16 = vpop.f32.mrf.mxu3  ;;  %v147_v17 = vpop.f32.mrf.mxu0  ;;  %v244_v28 = vadd.f32 %v243_v15, %v2517_v22 }
  0x93   :  { %v148_v19 = vadd.f32 %v147_v17, %v2510_v10  ;;  %v196_v20 = vpop.f32.mrf.mxu1  ;;  %v293_v30 = vadd.f32 %v292_v16, %v2520_v24 }
  0x94   :  { %v197_v23 = vadd.f32 %v196_v20, %v2512_v12  ;;  %v334_v37 = vmax.f32 %v244_v28, 0.0 }
  0x95   :  { %v336_v25 = vmax.f32 %v148_v19, 0.0  ;;  %v335_v39 = vmax.f32 %v293_v30, 0.0 }
  0x96   :  { %v337_v26 = vmax.f32 %v197_v23, 0.0 }
  0x97   :  { %v2522_v27 = vpack.c.bf16 %v336_v25, %v332_v18 }
  0x98   :  { %v2525_v29 = vpack.c.bf16 %v337_v26, %v333_v21 }
  0x99   :  { %v245_v31 = vpop.f32.mrf.mxu2  ;;  %1084 = vmatmul.bf16.vlgmr.msrb.gmra.mxu0 %v2522_v27 }
  0x9a   :  { %v246_v32 = vadd.f32 %v245_v31, %v2517_v22  ;;  %v294_v33 = vpop.f32.mrf.mxu3  ;;  %1133 = vmatmul.bf16.vlgmr.msrb.gmra.mxu1 %v2525_v29  ;;  %v150_v34 = vpop.f32.mrf.mxu0 }
  0x9b   :  { %v295_v35 = vadd.f32 %v294_v33, %v2520_v24  ;;  %v199_v36 = vpop.f32.mrf.mxu1  ;;  %v151_v42 = vadd.f32 %v150_v34, %v2510_v10 }
  0x9c   :  { %v338_v38 = vmax.f32 %v246_v32, 0.0  ;;  %v200_v44 = vadd.f32 %v199_v36, %v2512_v12 }
  0x9d   :  { %v339_v40 = vmax.f32 %v295_v35, 0.0  ;;  %v340_v48 = vmax.f32 %v151_v42, 0.0 }
  0x9e   :  { %v2532_v41 = vpack.c.bf16 %v338_v38, %v334_v37  ;;  %v341_v51 = vmax.f32 %v200_v44, 0.0 }
  0x9f   :  { %v2535_v43 = vpack.c.bf16 %v339_v40, %v335_v39 }
  0xa0   :  { %1182 = vmatmul.bf16.vlgmr.msrb.gmra.mxu2 %v2532_v41 }
  0xa1   :  { %1231 = vmatmul.bf16.vlgmr.msrb.gmra.mxu3 %v2535_v43  ;;  %v248_v45 = vpop.f32.mrf.mxu2 }
  0xa2   :  { %v297_v46 = vpop.f32.mrf.mxu3  ;;  %v152_v47 = vpop.f32.mrf.mxu0  ;;  %v249_v56 = vadd.f32 %v248_v45, %v2517_v22 }
  0xa3   :  { %v153_v49 = vadd.f32 %v152_v47, %v2510_v10  ;;  %v201_v50 = vpop.f32.mrf.mxu1  ;;  %v298_v58 = vadd.f32 %v297_v46, %v2520_v24 }
  0xa4   :  { %v202_v52 = vadd.f32 %v201_v50, %v2512_v12  ;;  %v342_v1 = vmax.f32 %v249_v56, 0.0  ;;  %v2120_v56 = vld [vmem:[#allocation3 + $0x234] sm:$0xf0] }
  0xa5   :  { %v344_v53 = vmax.f32 %v153_v49, 0.0  ;;  %v343_v3 = vmax.f32 %v298_v58, 0.0 }
  0xa6   :  { %v345_v54 = vmax.f32 %v202_v52, 0.0 }
  0xa7   :  { %v2542_v55 = vpack.c.bf16 %v344_v53, %v340_v48 }
  0xa8   :  { %v2545_v57 = vpack.c.bf16 %v345_v54, %v341_v51  ;;  %v2297_v54 = vld [vmem:[#allocation3 + $0x22c] sm:$0xf] }
  0xa9   :  { %v250_v59 = vpop.f32.mrf.mxu2  ;;  %1089 = vmatmul.bf16.gmra.mxu0 %v2542_v55 }
  0xaa   :  { %v251_v60 = vadd.f32 %v250_v59, %v2517_v22  ;;  %v299_v61 = vpop.f32.mrf.mxu3  ;;  %1138 = vmatmul.bf16.gmra.mxu1 %v2545_v57  ;;  %v155_v62 = vpop.f32.mrf.mxu0  ;;  %v2123_v59 = vor.u32 %v2297_v54, %v2120_v56  ;;  %v2318_v54 = vld [vmem:[#allocation3 + $0x2d4] sm:$0xf]  ;;  %v2204_v56 = vld [vmem:[#allocation3 + $0x2dc] sm:$0xf0] }
  0xab   :  { %v300_v63 = vadd.f32 %v299_v61, %v2520_v24  ;;  %v204_v0 = vpop.f32.mrf.mxu1  ;;  %v156_v6 = vadd.f32 %v155_v62, %v2510_v10  ;;  %v1928_v61 = vld [vmem:[#allocation3 + $0xb4] sm:$0xf0] }
  0xac   :  { %v346_v2 = vmax.f32 %v251_v60, 0.0  ;;  %v205_v8 = vadd.f32 %v204_v0, %v2512_v12  ;;  %v2249_v60 = vld [vmem:[#allocation3 + $0xac] sm:$0xf]  ;;  %1370 = vmatpush.bf16.msra.mxu2 %v2123_v59 }
  0xad   :  { %v347_v4 = vmax.f32 %v300_v63, 0.0  ;;  %v348_v14 = vmax.f32 %v156_v6, 0.0  ;;  %v1931_v63 = vor.u32 %v2249_v60, %v1928_v61  ;;  %v2321_v0 = vld [vmem:[#allocation3 + $0x2ec] sm:$0xf]  ;;  %v2207_v61 = vor.u32 %v2318_v54, %v2204_v56  ;;  %v2192_v54 = vld [vmem:[#allocation3 + $0x2c4] sm:$0xf0] }
  0xae   :  { %v2552_v5 = vpack.c.bf16 %v346_v2, %v342_v1  ;;  %v349_v17 = vmax.f32 %v205_v8, 0.0  ;;  %v2216_v1 = vld [vmem:[#allocation3 + $0x2f4] sm:$0xf0]  ;;  %v2273_v2 = vld [vmem:[#allocation3 + $0x16c] sm:$0xf] }
  0xaf   :  { %v2555_v7 = vpack.c.bf16 %v347_v4, %v343_v3  ;;  %v2219_v6 = vor.u32 %v2321_v0, %v2216_v1  ;;  %v2024_v8 = vld [vmem:[#allocation3 + $0x174] sm:$0xf0]  ;;  %1272 = vmatpush.bf16.msra.mxu0 %v1931_v63  ;;  %v2012_v63 = vld [vmem:[#allocation3 + $0x15c] sm:$0xf0] }
  0xb0   :  { %1187 = vmatmul.bf16.gmra.mxu2 %v2552_v5 }
  0xb1   :  { %1236 = vmatmul.bf16.gmra.mxu3 %v2555_v7  ;;  %v253_v9 = vpop.f32.mrf.mxu2 }
  0xb2   :  { %v302_v11 = vpop.f32.mrf.mxu3  ;;  %v157_v13 = vpop.f32.mrf.mxu0  ;;  %v254_v23 = vadd.f32 %v253_v9, %v2517_v22  ;;  %1419 = vmatpush.bf16.msra.mxu3 %v2219_v6 }
  0xb3   :  { %v158_v15 = vadd.f32 %v157_v13, %v2510_v10  ;;  %v206_v16 = vpop.f32.mrf.mxu1  ;;  %v303_v26 = vadd.f32 %v302_v11, %v2520_v24  ;;  %v2027_v13 = vor.u32 %v2273_v2, %v2024_v8 }
  0xb4   :  { %v207_v18 = vadd.f32 %v206_v16, %v2512_v12  ;;  %v350_v35 = vmax.f32 %v254_v23, 0.0 }
  0xb5   :  { %v352_v19 = vmax.f32 %v158_v15, 0.0  ;;  %v351_v37 = vmax.f32 %v303_v26, 0.0  ;;  %1321 = vmatpush.bf16.msra.mxu1 %v2027_v13 }
  0xb6   :  { %v353_v20 = vmax.f32 %v207_v18, 0.0  ;;  %1420 = vmatpush.bf16.msra.mxu3 %v2207_v61  ;;  %v1892_v61 = vld [vmem:[#allocation3 + $0x6c] sm:$0xf0] }
  0xb7   :  { %v2562_v21 = vpack.c.bf16 %v352_v19, %v348_v14 }
  0xb8   :  { %v2565_v25 = vpack.c.bf16 %v353_v20, %v349_v17 }
  0xb9   :  { %v255_v28 = vpop.f32.mrf.mxu2  ;;  %1094 = vmatmul.bf16.gmra.mxu0 %v2562_v21 }
  0xba   :  { %v256_v30 = vadd.f32 %v255_v28, %v2517_v22  ;;  %v304_v31 = vpop.f32.mrf.mxu3  ;;  %1143 = vmatmul.bf16.gmra.mxu1 %v2565_v25  ;;  %v160_v32 = vpop.f32.mrf.mxu0 }
  0xbb   :  { %v305_v33 = vadd.f32 %v304_v31, %v2520_v24  ;;  %v209_v34 = vpop.f32.mrf.mxu1  ;;  %v161_v40 = vadd.f32 %v160_v32, %v2510_v10 }
  0xbc   :  { %v354_v36 = vmax.f32 %v256_v30, 0.0  ;;  %v210_v44 = vadd.f32 %v209_v34, %v2512_v12 }
  0xbd   :  { %v355_v38 = vmax.f32 %v305_v33, 0.0  ;;  %v356_v48 = vmax.f32 %v161_v40, 0.0 }
  0xbe   :  { %v2572_v39 = vpack.c.bf16 %v354_v36, %v350_v35  ;;  %v357_v51 = vmax.f32 %v210_v44, 0.0 }
  0xbf   :  { %v2575_v42 = vpack.c.bf16 %v355_v38, %v351_v37 }
  0xc0   :  { %1192 = vmatmul.bf16.gmra.mxu2 %v2572_v39 }
  0xc1   :  { %1241 = vmatmul.bf16.gmra.mxu3 %v2575_v42  ;;  %v258_v45 = vpop.f32.mrf.mxu2 }
  0xc2   :  { %v307_v46 = vpop.f32.mrf.mxu3  ;;  %v162_v47 = vpop.f32.mrf.mxu0  ;;  %v259_v3 = vadd.f32 %v258_v45, %v2517_v22 }
  0xc3   :  { %v163_v49 = vadd.f32 %v162_v47, %v2510_v10  ;;  %v211_v50 = vpop.f32.mrf.mxu1  ;;  %v308_v9 = vadd.f32 %v307_v46, %v2520_v24  ;;  %v2294_v46 = vld [vmem:[#allocation3 + $0x214] sm:$0xf]  ;;  %v2108_v47 = vld [vmem:[#allocation3 + $0x21c] sm:$0xf0] }
  0xc4   :  { %v212_v52 = vadd.f32 %v211_v50, %v2512_v12  ;;  %v358_v19 = vmax.f32 %v259_v3, 0.0  ;;  %v2246_v50 = vld [vmem:[#allocation3 + $0x94] sm:$0xf] }
  0xc5   :  { %v360_v53 = vmax.f32 %v163_v49, 0.0  ;;  %v359_v23 = vmax.f32 %v308_v9, 0.0  ;;  %v2111_v49 = vor.u32 %v2294_v46, %v2108_v47 }
  0xc6   :  { %v361_v58 = vmax.f32 %v212_v52, 0.0 }
  0xc7   :  { %v2582_v62 = vpack.c.bf16 %v360_v53, %v356_v48  ;;  %1371 = vmatpush.bf16.msra.mxu2 %v2111_v49  ;;  %v2096_v49 = vld [vmem:[#allocation3 + $0x204] sm:$0xf0] }
  0xc8   :  { %v2585_v4 = vpack.c.bf16 %v361_v58, %v357_v51  ;;  %v1916_v51 = vld [vmem:[#allocation3 + $0x9c] sm:$0xf0]  ;;  %v2270_v58 = vld [vmem:[#allocation3 + $0x154] sm:$0xf] }
  0xc9   :  { %v260_v11 = vpop.f32.mrf.mxu2  ;;  %1099 = vmatmul.bf16.gmra.mxu0 %v2582_v62  ;;  %v1919_v53 = vor.u32 %v2246_v50, %v1916_v51  ;;  %v2015_v2 = vor.u32 %v2270_v58, %v2012_v63  ;;  %v2264_v63 = vld [vmem:[#allocation3 + $0x124] sm:$0xf] }
  0xca   :  { %v261_v14 = vadd.f32 %v260_v11, %v2517_v22  ;;  %v309_v15 = vpop.f32.mrf.mxu3  ;;  %1148 = vmatmul.bf16.gmra.mxu1 %v2585_v4  ;;  %v165_v16 = vpop.f32.mrf.mxu0 }
  0xcb   :  { %v310_v17 = vadd.f32 %v309_v15, %v2520_v24  ;;  %v214_v18 = vpop.f32.mrf.mxu1  ;;  %v166_v30 = vadd.f32 %v165_v16, %v2510_v10  ;;  %1273 = vmatpush.bf16.msra.mxu0 %v1919_v53  ;;  %1322 = vmatpush.bf16.msra.mxu1 %v2015_v2  ;;  %v2315_v53 = vld [vmem:[#allocation3 + $0x2bc] sm:$0xf] }
  0xcc   :  { %v362_v20 = vmax.f32 %v261_v14, 0.0  ;;  %v215_v32 = vadd.f32 %v214_v18, %v2512_v12  ;;  %v2195_v58 = vor.u32 %v2315_v53, %v2192_v54  ;;  %v1964_v53 = vld [vmem:[#allocation3 + $0xfc] sm:$0xf0] }
  0xcd   :  { %v363_v26 = vmax.f32 %v310_v17, 0.0  ;;  %v364_v36 = vmax.f32 %v166_v30, 0.0  ;;  %v1904_v30 = vld [vmem:[#allocation3 + $0x84] sm:$0xf0] }
  0xce   :  { %v2592_v28 = vpack.c.bf16 %v362_v20, %v358_v19  ;;  %v365_v40 = vmax.f32 %v215_v32, 0.0  ;;  %v2267_v32 = vld [vmem:[#allocation3 + $0x13c] sm:$0xf]  ;;  %1421 = vmatpush.bf16.msra.mxu3 %v2195_v58 }
  0xcf   :  { %v2595_v31 = vpack.c.bf16 %v363_v26, %v359_v23  ;;  %v2243_v26 = vld [vmem:[#allocation3 + $0x7c] sm:$0xf] }
  0xd0   :  { %1197 = vmatmul.bf16.gmra.mxu2 %v2592_v28 }
  0xd1   :  { %1246 = vmatmul.bf16.gmra.mxu3 %v2595_v31  ;;  %v263_v33 = vpop.f32.mrf.mxu2 }
  0xd2   :  { %v312_v34 = vpop.f32.mrf.mxu3  ;;  %v167_v35 = vpop.f32.mrf.mxu0  ;;  %v264_v59 = vadd.f32 %v263_v33, %v2517_v22 }
  0xd3   :  { %v168_v37 = vadd.f32 %v167_v35, %v2510_v10  ;;  %v216_v38 = vpop.f32.mrf.mxu1  ;;  %v313_v0 = vadd.f32 %v312_v34, %v2520_v24  ;;  %v1907_v35 = vor.u32 %v2243_v26, %v1904_v30 }
  0xd4   :  { %v217_v44 = vadd.f32 %v216_v38, %v2512_v12  ;;  %v366_v13 = vmax.f32 %v264_v59, 0.0  ;;  %v2240_v59 = vld [vmem:[#allocation3 + $0x64] sm:$0xf] }
  0xd5   :  { %v368_v45 = vmax.f32 %v168_v37, 0.0  ;;  %v367_v15 = vmax.f32 %v313_v0, 0.0  ;;  %1274 = vmatpush.bf16.msra.mxu0 %v1907_v35  ;;  %v1895_v2 = vor.u32 %v2240_v59, %v1892_v61  ;;  %v2312_v35 = vld [vmem:[#allocation3 + $0x2a4] sm:$0xf]  ;;  %v2285_v61 = vld [vmem:[#allocation3 + $0x1cc] sm:$0xf] }
  0xd6   :  { %v369_v48 = vmax.f32 %v217_v44, 0.0 }
  0xd7   :  { %v2602_v52 = vpack.c.bf16 %v368_v45, %v364_v36  ;;  %v2000_v36 = vld [vmem:[#allocation3 + $0x144] sm:$0xf0] }
  0xd8   :  { %v2605_v60 = vpack.c.bf16 %v369_v48, %v365_v40  ;;  %v2003_v44 = vor.u32 %v2267_v32, %v2000_v36  ;;  %v2291_v48 = vld [vmem:[#allocation3 + $0x1fc] sm:$0xf] }
  0xd9   :  { %v265_v1 = vpop.f32.mrf.mxu2  ;;  %1104 = vmatmul.bf16.gmra.mxu0 %v2602_v52  ;;  %v2099_v51 = vor.u32 %v2291_v48, %v2096_v49  ;;  %v1868_v48 = vld [vmem:[#allocation3 + $0x3c] sm:$0xf0] }
  0xda   :  { %v266_v3 = vadd.f32 %v265_v1, %v2517_v22  ;;  %v314_v6 = vpop.f32.mrf.mxu3  ;;  %1153 = vmatmul.bf16.gmra.mxu1 %v2605_v60  ;;  %v170_v8 = vpop.f32.mrf.mxu0  ;;  %1275 = vmatpush.bf16.msra.mxu0 %v1895_v2 }
  0xdb   :  { %v315_v9 = vadd.f32 %v314_v6, %v2520_v24  ;;  %v219_v11 = vpop.f32.mrf.mxu1  ;;  %v171_v18 = vadd.f32 %v170_v8, %v2510_v10  ;;  %1323 = vmatpush.bf16.msra.mxu1 %v2003_v44  ;;  %1372 = vmatpush.bf16.msra.mxu2 %v2099_v51  ;;  %v2258_v51 = vld [vmem:[#allocation3 + $0xf4] sm:$0xf] }
  0xdc   :  { %v370_v14 = vmax.f32 %v266_v3, 0.0  ;;  %v220_v20 = vadd.f32 %v219_v11, %v2512_v12  ;;  %v1988_v3 = vld [vmem:[#allocation3 + $0x12c] sm:$0xf0]  ;;  %v2237_v11 = vld [vmem:[#allocation3 + $0x4c] sm:$0xf]  ;;  %v1967_v59 = vor.u32 %v2258_v51, %v1964_v53 }
  0xdd   :  { %v371_v16 = vmax.f32 %v315_v9, 0.0  ;;  %v372_v37 = vmax.f32 %v171_v18, 0.0  ;;  %v1991_v9 = vor.u32 %v2264_v63, %v1988_v3  ;;  %v2072_v63 = vld [vmem:[#allocation3 + $0x1d4] sm:$0xf0] }
  0xde   :  { %v2612_v17 = vpack.c.bf16 %v370_v14, %v366_v13  ;;  %v373_v45 = vmax.f32 %v220_v20, 0.0  ;;  %v1880_v13 = vld [vmem:[#allocation3 + $0x54] sm:$0xf0]  ;;  %v2261_v14 = vld [vmem:[#allocation3 + $0x10c] sm:$0xf]  ;;  %v2075_v3 = vor.u32 %v2285_v61, %v2072_v63 }
  0xdf   :  { %v2615_v19 = vpack.c.bf16 %v371_v16, %v367_v15  ;;  %v1883_v20 = vor.u32 %v2237_v11, %v1880_v13  ;;  %1324 = vmatpush.bf16.msra.mxu1 %v1991_v9  ;;  %v2231_v11 = vld [vmem:[#allocation3 + $0x1c] sm:$0xf]  ;;  %v1856_v13 = vld [vmem:[#allocation3 + $0x24] sm:$0xf0] }
  0xe0   :  { %1202 = vmatmul.bf16.gmra.mxu2 %v2612_v17  ;;  %v2048_v61 = vld [vmem:[#allocation3 + $0x1a4] sm:$0xf0] }
  0xe1   :  { %1251 = vmatmul.bf16.gmra.mxu3 %v2615_v19  ;;  %v268_v23 = vpop.f32.mrf.mxu2  ;;  %1276 = vmatpush.bf16.msra.mxu0 %v1883_v20  ;;  %v1952_v20 = vld [vmem:[#allocation3 + $0xe4] sm:$0xf0] }
  0xe2   :  { %v317_v33 = vpop.f32.mrf.mxu3  ;;  %v172_v34 = vpop.f32.mrf.mxu0  ;;  %v269_v0 = vadd.f32 %v268_v23, %v2517_v22  ;;  %v1976_v23 = vld [vmem:[#allocation3 + $0x114] sm:$0xf0] }
  0xe3   :  { %v173_v38 = vadd.f32 %v172_v34, %v2510_v10  ;;  %v221_v40 = vpop.f32.mrf.mxu1  ;;  %v318_v6 = vadd.f32 %v317_v33, %v2520_v24  ;;  %v1979_v32 = vor.u32 %v2261_v14, %v1976_v23  ;;  %v2288_v33 = vld [vmem:[#allocation3 + $0x1e4] sm:$0xf]  ;;  %v2084_v34 = vld [vmem:[#allocation3 + $0x1ec] sm:$0xf0]  ;;  %v2255_v14 = vld [vmem:[#allocation3 + $0xdc] sm:$0xf] }
  0xe4   :  { %v222_v46 = vadd.f32 %v221_v40, %v2512_v12  ;;  %v374_v36 = vmax.f32 %v269_v0, 0.0  ;;  %v2180_v40 = vld [vmem:[#allocation3 + $0x2ac] sm:$0xf0]  ;;  %v2309_v0 = vld [vmem:[#allocation3 + $0x28c] sm:$0xf] }
  0xe5   :  { %v376_v47 = vmax.f32 %v173_v38, 0.0  ;;  %v2087_v38 = vor.u32 %v2288_v33, %v2084_v34  ;;  %v375_v44 = vmax.f32 %v318_v6, 0.0  ;;  %1325 = vmatpush.bf16.msra.mxu1 %v1979_v32  ;;  %v2168_v6 = vld [vmem:[#allocation3 + $0x294] sm:$0xf0]  ;;  %v2282_v23 = vld [vmem:[#allocation3 + $0x1b4] sm:$0xf]  ;;  %v1955_v34 = vor.u32 %v2255_v14, %v1952_v20 }
  0xe6   :  { %v377_v50 = vmax.f32 %v222_v46, 0.0  ;;  %v2183_v46 = vor.u32 %v2312_v35, %v2180_v40  ;;  %v2171_v9 = vor.u32 %v2309_v0, %v2168_v6  ;;  %v2306_v35 = vld [vmem:[#allocation3 + $0x274] sm:$0xf]  ;;  %v2303_v6 = vld [vmem:[#allocation3 + $0x25c] sm:$0xf] }
  0xe7   :  { %v2622_v56 = vpack.c.bf16 %v376_v47, %v372_v37  ;;  %v2234_v47 = vld [vmem:[#allocation3 + $0x34] sm:$0xf]  ;;  %1373 = vmatpush.bf16.msra.mxu2 %v2087_v38 }
  0xe8   :  { %v2625_v1 = vpack.c.bf16 %v377_v50, %v373_v45  ;;  %v1871_v50 = vor.u32 %v2234_v47, %v1868_v48  ;;  %1422 = vmatpush.bf16.msra.mxu3 %v2183_v46  ;;  %v2228_v46 = vld [vmem:[#allocation3 + $0x4] sm:$0xf]  ;;  %v1844_v48 = vld [vmem:[#allocation3 + $0xc] sm:$0xf0] }
  0xe9   :  { %2921 = vst [vmem:[#allocation6_spill] sm:$0xff] %v2622_v56  ;;  %v270_v8 = vpop.f32.mrf.mxu2  ;;  %1109 = vmatmul.bf16.gmra.mxu0 %v2622_v56  ;;  %1326 = vmatpush.bf16.msra.mxu1 %v1967_v59  ;;  %v1847_v53 = vor.u32 %v2228_v46, %v1844_v48  ;;  %v2279_v59 = vld [vmem:[#allocation3 + $0x19c] sm:$0xf] }
  0xea   :  { %2922 = vst [vmem:[#allocation7_spill] sm:$0xff] %v2625_v1  ;;  %v271_v15 = vadd.f32 %v270_v8, %v2517_v22  ;;  %v319_v16 = vpop.f32.mrf.mxu3  ;;  %1158 = vmatmul.bf16.gmra.mxu1 %v2625_v1  ;;  %v175_v18 = vpop.f32.mrf.mxu0  ;;  %1277 = vmatpush.bf16.msra.mxu0 %v1871_v50  ;;  %v2252_v50 = vld [vmem:[#allocation3 + $0xc4] sm:$0xf] }
  0xeb   :  { %v320_v26 = vadd.f32 %v319_v16, %v2520_v24  ;;  %v224_v30 = vpop.f32.mrf.mxu1  ;;  %v176_v54 = vadd.f32 %v175_v18, %v2510_v10  ;;  %1374 = vmatpush.bf16.msra.mxu2 %v2075_v3  ;;  %v1859_v18 = vor.u32 %v2231_v11, %v1856_v13  ;;  %v2051_v3 = vor.u32 %v2279_v59, %v2048_v61 }
  0xec   :  { %v378_v37 = vmax.f32 %v271_v15, 0.0  ;;  %v225_v2 = vadd.f32 %v224_v30, %v2512_v12  ;;  %1423 = vmatpush.bf16.msra.mxu3 %v2171_v9  ;;  %v2144_v9 = vld [vmem:[#allocation3 + $0x264] sm:$0xf0] }
  0xed   :  { %v379_v45 = vmax.f32 %v320_v26, 0.0  ;;  %v2060_v26 = vld [vmem:[#allocation3 + $0x1bc] sm:$0xf0]  ;;  %v380_v30 = vmax.f32 %v176_v54, 0.0  ;;  %1327 = vmatpush.bf16.msra.mxu1 %v1955_v34  ;;  %v1940_v54 = vld [vmem:[#allocation3 + $0xcc] sm:$0xf0]  ;;  %v2147_v14 = vor.u32 %v2303_v6, %v2144_v9 }
  0xee   :  { %v2632_v49 = vpack.c.bf16 %v378_v37, %v374_v36  ;;  %v2156_v36 = vld [vmem:[#allocation3 + $0x27c] sm:$0xf0]  ;;  %v381_v37 = vmax.f32 %v225_v2, 0.0  ;;  %v2063_v40 = vor.u32 %v2282_v23, %v2060_v26  ;;  %1278 = vmatpush.bf16.msra.mxu0 %v1859_v18  ;;  %v1943_v2 = vor.u32 %v2252_v50, %v1940_v54  ;;  %v2036_v23 = vld [vmem:[#allocation3 + $0x18c] sm:$0xf0] }
  0xef   :  { %v2635_v58 = vpack.c.bf16 %v379_v45, %v375_v44  ;;  %v2159_v44 = vor.u32 %v2306_v35, %v2156_v36  ;;  %v2300_v26 = vld [vmem:[#allocation3 + $0x244] sm:$0xf] }
  0xf0   :  { %2923 = vst [vmem:[#allocation8_spill] sm:$0xff] %v2632_v49  ;;  %1207 = vmatmul.bf16.gmra.mxu2 %v2632_v49 }
  0xf1   :  { %2924 = vst [vmem:[#allocation9_spill] sm:$0xff] %v2635_v58  ;;  %1256 = vmatmul.bf16.gmra.mxu3 %v2635_v58  ;;  %v273_v8 = vpop.f32.mrf.mxu2  ;;  %1375 = vmatpush.bf16.msra.mxu2 %v2063_v40 }
  0xf2   :  { %v322_v15 = vpop.f32.mrf.mxu3  ;;  %v177_v16 = vpop.f32.mrf.mxu0  ;;  %1424 = vmatpush.bf16.msra.mxu3 %v2159_v44  ;;  %v274_v63 = vadd.f32 %v273_v8, %v2517_v22  ;;  %1279 = vmatpush.bf16.msra.mxu0 %v1847_v53  ;;  %v2276_v8 = vld [vmem:[#allocation3 + $0x184] sm:$0xf] }
  0xf3   :  { %v178_v32 = vadd.f32 %v177_v16, %v2510_v10  ;;  %v226_v33 = vpop.f32.mrf.mxu1  ;;  %v323_v11 = vadd.f32 %v322_v15, %v2520_v24  ;;  %1328 = vmatpush.bf16.msra.mxu1 %v1943_v2  ;;  %v2039_v15 = vor.u32 %v2276_v8, %v2036_v23 }
  0xf4   :  { %v227_v38 = vadd.f32 %v226_v33, %v2512_v12  ;;  %v2132_v33 = vld [vmem:[#allocation3 + $0x24c] sm:$0xf0]  ;;  %v382_v34 = vmax.f32 %v274_v63, 0.0 }
  0xf5   :  { %v384_v45 = vmax.f32 %v178_v32, 0.0  ;;  %1376 = vmatpush.bf16.msra.mxu2 %v2051_v3  ;;  %v2135_v36 = vor.u32 %v2300_v26, %v2132_v33 }
  0xf6   :  { %v385_v47 = vmax.f32 %v227_v38, 0.0  ;;  %1425 = vmatpush.bf16.msra.mxu3 %v2147_v14 }
  0xf7   :  { %v2642_v51 = vpack.c.bf16 %v384_v45, %v380_v30 }
  0xf8   :  { %v2645_v0 = vpack.c.bf16 %v385_v47, %v381_v37  ;;  %v383_v37 = vmax.f32 %v323_v11, 0.0 }
  0xf9   :  { %2925 = vst [vmem:[#allocation10_spill] sm:$0xff] %v2642_v51  ;;  %v275_v13 = vpop.f32.mrf.mxu2  ;;  %1114 = vmatmul.bf16.gmra.mxu0 %v2642_v51  ;;  %1377 = vmatpush.bf16.msra.mxu2 %v2039_v15 }
  0xfa   :  { %2926 = vst [vmem:[#allocation11_spill] sm:$0xff] %v2645_v0  ;;  %v276_v16 = vadd.f32 %v275_v13, %v2517_v22  ;;  %v324_v18 = vpop.f32.mrf.mxu3  ;;  %1163 = vmatmul.bf16.gmra.mxu1 %v2645_v0  ;;  %v180_v20 = vpop.f32.mrf.mxu0  ;;  %1426 = vmatpush.bf16.msra.mxu3 %v2135_v36 }
  0xfb   :  { %v325_v30 = vadd.f32 %v324_v18, %v2520_v24  ;;  %v229_v32 = vpop.f32.mrf.mxu1  ;;  %v181_v44 = vadd.f32 %v180_v20, %v2510_v10 }
  0xfc   :  { %v386_v35 = vmax.f32 %v276_v16, 0.0  ;;  %v230_v46 = vadd.f32 %v229_v32, %v2512_v12  ;;  %v2680_v32 = vld [vmem:[%s2904_s4] sm:$0x7] }
  0xfd   :  { %v387_v38 = vmax.f32 %v325_v30, 0.0  ;;  %v388_v53 = vmax.f32 %v181_v44, 0.0  ;;  %2933 = vst [vmem:[#allocation18_spill] sm:$0xff] %v2680_v32 }
  0xfe   :  { %v2652_v40 = vpack.c.bf16 %v386_v35, %v382_v34  ;;  %v389_v61 = vmax.f32 %v230_v46, 0.0 }
  0xff   :  { %v2655_v45 = vpack.c.bf16 %v387_v38, %v383_v37 }
 0x100   :  { %2927 = vst [vmem:[#allocation12_spill] sm:$0xff] %v2652_v40  ;;  %1212 = vmatmul.bf16.gmra.mxu2 %v2652_v40 }
 0x101   :  { %2928 = vst [vmem:[#allocation13_spill] sm:$0xff] %v2655_v45  ;;  %1261 = vmatmul.bf16.gmra.mxu3 %v2655_v45  ;;  %v278_v47 = vpop.f32.mrf.mxu2 }
 0x102   :  { %v327_v48 = vpop.f32.mrf.mxu3  ;;  %v182_v50 = vpop.f32.mrf.mxu0  ;;  %v279_v9 = vadd.f32 %v278_v47, %v2517_v22 }
 0x103   :  { %v183_v54 = vadd.f32 %v182_v50, %v2510_v10  ;;  %v231_v59 = vpop.f32.mrf.mxu1  ;;  %v328_v13 = vadd.f32 %v327_v48, %v2520_v24 }
 0x104   :  { %v232_v63 = vadd.f32 %v231_v59, %v2512_v12  ;;  %v390_v18 = vmax.f32 %v279_v9, 0.0 }
 0x105   :  { %v392_v2 = vmax.f32 %v183_v54, 0.0  ;;  %v391_v8 = vmax.f32 %v328_v13, 0.0 }
 0x106   :  { %v393_v3 = vmax.f32 %v232_v63, 0.0 }
 0x107   :  { %v2662_v6 = vpack.c.bf16 %v392_v2, %v388_v53 }
 0x108   :  { %v2665_v11 = vpack.c.bf16 %v393_v3, %v389_v61 }
 0x109   :  { %2929 = vst [vmem:[#allocation14_spill] sm:$0xff] %v2662_v6  ;;  %v280_v14 = vpop.f32.mrf.mxu2  ;;  %1119 = vmatmul.bf16.gmra.mxu0 %v2662_v6 }
 0x10a   :  { %2930 = vst [vmem:[#allocation15_spill] sm:$0xff] %v2665_v11  ;;  %v281_v16 = vadd.f32 %v280_v14, %v2517_v22  ;;  %v329_v10 = vpop.f32.mrf.mxu3  ;;  %1168 = vmatmul.bf16.gmra.mxu1 %v2665_v11  ;;  %v2684_v22 = vperm.slane %v2680_v32, 0 }
 0x10b   :  { %v330_v12 = vadd.f32 %v329_v10, %v2520_v24 }
 0x10c   :  { %v394_v20 = vmax.f32 %v281_v16, 0.0 }
 0x10d   :  { %v395_v23 = vmax.f32 %v330_v12, 0.0 }
 0x10e   :  { %v2672_v26 = vpack.c.bf16 %v394_v20, %v390_v18 }
 0x10f   :  { %v2674_v30 = vpack.c.bf16 %v395_v23, %v391_v8 }
 0x110   :  { %2931 = vst [vmem:[#allocation16_spill] sm:$0xff] %v2672_v26  ;;  %1217 = vmatmul.bf16.gmra.mxu2 %v2672_v26 }
 0x111   :  { %2932 = vst [vmem:[#allocation17_spill] sm:$0xff] %v2674_v30  ;;  %1266 = vmatmul.bf16.gmra.mxu3 %v2674_v30 }
 0x116   :  { %v1085_v24 = vpop.f32.mrf.mxu0 }
 0x117   :  { %v1086_v15 = vadd.f32 %v1085_v24, %v2684_v22  ;;  %v1134_v33 = vpop.f32.mrf.mxu1 }
 0x119   :  { %v1135_v34 = vadd.f32 %v1134_v33, %v1086_v15  ;;  %1280 = vmatmul.bf16.vlgmr.msra.gmra.mxu0 %v2522_v27 }
 0x11a   :  { %1329 = vmatmul.bf16.vlgmr.msra.gmra.mxu1 %v2525_v29 }
 0x11e   :  { %v1087_v35 = vpop.f32.mrf.mxu0 }
 0x11f   :  { %v1088_v36 = vadd.f32 %v1087_v35, %v2684_v22  ;;  %v1136_v37 = vpop.f32.mrf.mxu1 }
 0x120   :  { %1378 = vmatmul.bf16.vlgmr.msra.gmra.mxu2 %v2532_v41 }
 0x121   :  { %v1137_v38 = vadd.f32 %v1136_v37, %v1088_v36  ;;  %1427 = vmatmul.bf16.vlgmr.msra.gmra.mxu3 %v2535_v43 }
 0x123   :  { %v1183_v44 = vpop.f32.mrf.mxu2 }
 0x124   :  { %v1184_v46 = vadd.f32 %v1183_v44, %v1135_v34  ;;  %v1232_v47 = vpop.f32.mrf.mxu3 }
 0x126   :  { %v1233_v48 = vadd.f32 %v1232_v47, %v1184_v46  ;;  %v1090_v50 = vpop.f32.mrf.mxu0 }
 0x127   :  { %v1091_v53 = vadd.f32 %v1090_v50, %v2684_v22  ;;  %v1139_v54 = vpop.f32.mrf.mxu1 }
 0x128   :  { %v1664_v16 = vmax.f32 %v1233_v48, 0.0 }
 0x129   :  { %v1140_v59 = vadd.f32 %v1139_v54, %v1091_v53  ;;  %1285 = vmatmul.bf16.gmra.mxu0 %v2542_v55 }
 0x12a   :  { %1334 = vmatmul.bf16.gmra.mxu1 %v2545_v57 }
 0x12b   :  { %v1185_v61 = vpop.f32.mrf.mxu2 }
 0x12c   :  { %v1186_v63 = vadd.f32 %v1185_v61, %v1137_v38  ;;  %v1234_v2 = vpop.f32.mrf.mxu3  ;;  %v2299_v61 = vld [vmem:[#allocation3 + $0x238] sm:$0xf0] }
 0x12e   :  { %v1235_v3 = vadd.f32 %v1234_v2, %v1186_v63  ;;  %v1092_v9 = vpop.f32.mrf.mxu0 }
 0x12f   :  { %v1093_v13 = vadd.f32 %v1092_v9, %v2684_v22  ;;  %v1141_v14 = vpop.f32.mrf.mxu1 }
 0x130   :  { %v1667_v10 = vmax.f32 %v1235_v3, 0.0  ;;  %1383 = vmatmul.bf16.gmra.mxu2 %v2552_v5 }
 0x131   :  { %v1142_v12 = vadd.f32 %v1141_v14, %v1093_v13  ;;  %1432 = vmatmul.bf16.gmra.mxu3 %v2555_v7 }
 0x132   :  { %v2698_v18 = vpack.c.bf16 %v1667_v10, %v1664_v16 }
 0x133   :  { %v1188_v20 = vpop.f32.mrf.mxu2 }
 0x134   :  { %v1189_v8 = vadd.f32 %v1188_v20, %v1140_v59  ;;  %v1237_v23 = vpop.f32.mrf.mxu3  ;;  %v2126_v59 = vld [vmem:[#allocation3 + $0x230] sm:$0xf] }
 0x135   :  { %v2127_v63 = vor.u32 %v2299_v61, %v2126_v59  ;;  %v1934_v20 = vld [vmem:[#allocation3 + $0xb0] sm:$0xf] }
 0x136   :  { %v1238_v24 = vadd.f32 %v1237_v23, %v1189_v8  ;;  %v1095_v15 = vpop.f32.mrf.mxu0  ;;  %v2251_v8 = vld [vmem:[#allocation3 + $0xb8] sm:$0xf0] }
 0x137   :  { %v1096_v33 = vadd.f32 %v1095_v15, %v2684_v22  ;;  %v1144_v34 = vpop.f32.mrf.mxu1  ;;  %1566 = vmatpush.bf16.msrb.mxu2 %v2127_v63  ;;  %v2222_v15 = vld [vmem:[#allocation3 + $0x2f0] sm:$0xf] }
 0x138   :  { %v1670_v50 = vmax.f32 %v1238_v24, 0.0  ;;  %v1935_v24 = vor.u32 %v2251_v8, %v1934_v20 }
 0x139   :  { %v1145_v35 = vadd.f32 %v1144_v34, %v1096_v33  ;;  %1290 = vmatmul.bf16.gmra.mxu0 %v2562_v21  ;;  %v2323_v33 = vld [vmem:[#allocation3 + $0x2f8] sm:$0xf0]  ;;  %v2030_v34 = vld [vmem:[#allocation3 + $0x170] sm:$0xf] }
 0x13a   :  { %1339 = vmatmul.bf16.gmra.mxu1 %v2565_v25  ;;  %1468 = vmatpush.bf16.msrb.mxu0 %v1935_v24 }
 0x13b   :  { %v1190_v36 = vpop.f32.mrf.mxu2 }
 0x13c   :  { %v1191_v37 = vadd.f32 %v1190_v36, %v1142_v12  ;;  %v1239_v38 = vpop.f32.mrf.mxu3  ;;  %v2223_v36 = vor.u32 %v2323_v33, %v2222_v15  ;;  %v1922_v15 = vld [vmem:[#allocation3 + $0x98] sm:$0xf]  ;;  %v2248_v33 = vld [vmem:[#allocation3 + $0xa0] sm:$0xf0] }
 0x13e   :  { %v1240_v44 = vadd.f32 %v1239_v38, %v1191_v37  ;;  %v1097_v46 = vpop.f32.mrf.mxu0  ;;  %1615 = vmatpush.bf16.msrb.mxu3 %v2223_v36  ;;  %v1923_v36 = vor.u32 %v2248_v33, %v1922_v15  ;;  %v2269_v15 = vld [vmem:[#allocation3 + $0x148] sm:$0xf0] }
 0x13f   :  { %v1098_v47 = vadd.f32 %v1097_v46, %v2684_v22  ;;  %v1146_v48 = vpop.f32.mrf.mxu1 }
 0x140   :  { %v1673_v53 = vmax.f32 %v1240_v44, 0.0  ;;  %1388 = vmatmul.bf16.gmra.mxu2 %v2572_v39  ;;  %1469 = vmatpush.bf16.msrb.mxu0 %v1923_v36 }
 0x141   :  { %v1147_v54 = vadd.f32 %v1146_v48, %v1098_v47  ;;  %1437 = vmatmul.bf16.gmra.mxu3 %v2575_v42 }
 0x142   :  { %v2706_v2 = vpack.c.bf16 %v1673_v53, %v1670_v50 }
 0x143   :  { %v1193_v3 = vpop.f32.mrf.mxu2 }
 0x144   :  { %v1194_v9 = vadd.f32 %v1193_v3, %v1145_v35  ;;  %v1242_v13 = vpop.f32.mrf.mxu3  ;;  %v2275_v35 = vld [vmem:[#allocation3 + $0x178] sm:$0xf0]  ;;  %v2114_v3 = vld [vmem:[#allocation3 + $0x218] sm:$0xf] }
 0x145   :  { %v2031_v38 = vor.u32 %v2275_v35, %v2030_v34  ;;  %v2210_v35 = vld [vmem:[#allocation3 + $0x2d8] sm:$0xf] }
 0x146   :  { %v1243_v14 = vadd.f32 %v1242_v13, %v1194_v9  ;;  %v1100_v16 = vpop.f32.mrf.mxu0  ;;  %v2296_v9 = vld [vmem:[#allocation3 + $0x220] sm:$0xf0] }
 0x147   :  { %v1101_v10 = vadd.f32 %v1100_v16, %v2684_v22  ;;  %v1149_v12 = vpop.f32.mrf.mxu1  ;;  %1517 = vmatpush.bf16.msrb.mxu1 %v2031_v38  ;;  %v2115_v13 = vor.u32 %v2296_v9, %v2114_v3  ;;  %v2018_v38 = vld [vmem:[#allocation3 + $0x158] sm:$0xf] }
 0x148   :  { %v1676_v59 = vmax.f32 %v1243_v14, 0.0 }
 0x149   :  { %v1150_v23 = vadd.f32 %v1149_v12, %v1101_v10  ;;  %1295 = vmatmul.bf16.gmra.mxu0 %v2582_v62  ;;  %1567 = vmatpush.bf16.msrb.mxu2 %v2115_v13 }
 0x14a   :  { %1344 = vmatmul.bf16.gmra.mxu1 %v2585_v4 }
 0x14b   :  { %v1195_v37 = vpop.f32.mrf.mxu2 }
 0x14c   :  { %v1196_v44 = vadd.f32 %v1195_v37, %v1147_v54  ;;  %v1244_v46 = vpop.f32.mrf.mxu3  ;;  %v2320_v37 = vld [vmem:[#allocation3 + $0x2e0] sm:$0xf0] }
 0x14e   :  { %v1245_v47 = vadd.f32 %v1244_v46, %v1196_v44  ;;  %v1102_v48 = vpop.f32.mrf.mxu0  ;;  %v2211_v44 = vor.u32 %v2320_v37, %v2210_v35 }
 0x14f   :  { %v1103_v50 = vadd.f32 %v1102_v48, %v2684_v22  ;;  %v1151_v53 = vpop.f32.mrf.mxu1 }
 0x150   :  { %v1679_v61 = vmax.f32 %v1245_v47, 0.0  ;;  %1393 = vmatmul.bf16.gmra.mxu2 %v2592_v28  ;;  %1616 = vmatpush.bf16.msrb.mxu3 %v2211_v44  ;;  %v1898_v44 = vld [vmem:[#allocation3 + $0x68] sm:$0xf] }
 0x151   :  { %v1152_v63 = vadd.f32 %v1151_v53, %v1103_v50  ;;  %1442 = vmatmul.bf16.gmra.mxu3 %v2595_v31 }
 0x152   :  { %v2714_v16 = vpack.c.bf16 %v1679_v61, %v1676_v59 }
 0x153   :  { %v1198_v54 = vpop.f32.mrf.mxu2 }
 0x154   :  { %v1199_v10 = vadd.f32 %v1198_v54, %v1150_v23  ;;  %v1247_v12 = vpop.f32.mrf.mxu3  ;;  %v2272_v23 = vld [vmem:[#allocation3 + $0x160] sm:$0xf0] }
 0x155   :  { %v2019_v47 = vor.u32 %v2272_v23, %v2018_v38  ;;  %v2242_v23 = vld [vmem:[#allocation3 + $0x70] sm:$0xf0] }
 0x156   :  { %v1248_v20 = vadd.f32 %v1247_v12, %v1199_v10  ;;  %v1105_v8 = vpop.f32.mrf.mxu0  ;;  %v2102_v10 = vld [vmem:[#allocation3 + $0x200] sm:$0xf]  ;;  %v2293_v12 = vld [vmem:[#allocation3 + $0x208] sm:$0xf0] }
 0x157   :  { %v1106_v24 = vadd.f32 %v1105_v8, %v2684_v22  ;;  %v1154_v14 = vpop.f32.mrf.mxu1  ;;  %1518 = vmatpush.bf16.msrb.mxu1 %v2019_v47  ;;  %v1910_v8 = vld [vmem:[#allocation3 + $0x80] sm:$0xf] }
 0x158   :  { %v1682_v9 = vmax.f32 %v1248_v20, 0.0 }
 0x159   :  { %v1155_v34 = vadd.f32 %v1154_v14, %v1106_v24  ;;  %1300 = vmatmul.bf16.gmra.mxu0 %v2602_v52  ;;  %v2103_v24 = vor.u32 %v2293_v12, %v2102_v10  ;;  %v2006_v14 = vld [vmem:[#allocation3 + $0x140] sm:$0xf]  ;;  %v2239_v10 = vld [vmem:[#allocation3 + $0x58] sm:$0xf0]  ;;  %v1982_v12 = vld [vmem:[#allocation3 + $0x110] sm:$0xf] }
 0x15a   :  { %1349 = vmatmul.bf16.gmra.mxu1 %v2605_v60  ;;  %v2007_v37 = vor.u32 %v2269_v15, %v2006_v14  ;;  %v2090_v15 = vld [vmem:[#allocation3 + $0x1e8] sm:$0xf] }
 0x15b   :  { %v1200_v46 = vpop.f32.mrf.mxu2  ;;  %1568 = vmatpush.bf16.msrb.mxu2 %v2103_v24 }
 0x15c   :  { %v1201_v48 = vadd.f32 %v1200_v46, %v1152_v63  ;;  %v1249_v50 = vpop.f32.mrf.mxu3  ;;  %v2245_v63 = vld [vmem:[#allocation3 + $0x88] sm:$0xf0]  ;;  %1519 = vmatpush.bf16.msrb.mxu1 %v2007_v37  ;;  %v1994_v46 = vld [vmem:[#allocation3 + $0x128] sm:$0xf] }
 0x15d   :  { %v1911_v35 = vor.u32 %v2245_v63, %v1910_v8  ;;  %v2263_v8 = vld [vmem:[#allocation3 + $0x118] sm:$0xf0] }
 0x15e   :  { %v1250_v53 = vadd.f32 %v1249_v50, %v1201_v48  ;;  %v1107_v59 = vpop.f32.mrf.mxu0  ;;  %v2266_v50 = vld [vmem:[#allocation3 + $0x130] sm:$0xf0]  ;;  %v1983_v14 = vor.u32 %v2263_v8, %v1982_v12  ;;  %v2287_v12 = vld [vmem:[#allocation3 + $0x1d8] sm:$0xf0]  ;;  %v2174_v8 = vld [vmem:[#allocation3 + $0x290] sm:$0xf] }
 0x15f   :  { %v1108_v61 = vadd.f32 %v1107_v59, %v2684_v22  ;;  %v1156_v3 = vpop.f32.mrf.mxu1  ;;  %1470 = vmatpush.bf16.msrb.mxu0 %v1911_v35  ;;  %v2198_v59 = vld [vmem:[#allocation3 + $0x2c0] sm:$0xf]  ;;  %v2186_v35 = vld [vmem:[#allocation3 + $0x2a8] sm:$0xf] }
 0x160   :  { %v1685_v13 = vmax.f32 %v1250_v53, 0.0  ;;  %1398 = vmatmul.bf16.gmra.mxu2 %v2612_v17 }
 0x161   :  { %v1157_v54 = vadd.f32 %v1156_v3, %v1108_v61  ;;  %1447 = vmatmul.bf16.gmra.mxu3 %v2615_v19  ;;  %v2317_v61 = vld [vmem:[#allocation3 + $0x2c8] sm:$0xf0]  ;;  %v1899_v3 = vor.u32 %v2242_v23, %v1898_v44  ;;  %v2314_v44 = vld [vmem:[#allocation3 + $0x2b0] sm:$0xf0] }
 0x162   :  { %v2722_v33 = vpack.c.bf16 %v1685_v13, %v1682_v9  ;;  %v1995_v9 = vor.u32 %v2266_v50, %v1994_v46  ;;  %v2199_v13 = vor.u32 %v2317_v61, %v2198_v59  ;;  %v2187_v23 = vor.u32 %v2314_v44, %v2186_v35  ;;  %v1874_v46 = vld [vmem:[#allocation3 + $0x38] sm:$0xf]  ;;  %v2236_v50 = vld [vmem:[#allocation3 + $0x40] sm:$0xf0] }
 0x163   :  { %v1203_v36 = vpop.f32.mrf.mxu2  ;;  %1471 = vmatpush.bf16.msrb.mxu0 %v1899_v3  ;;  %v1970_v59 = vld [vmem:[#allocation3 + $0xf8] sm:$0xf] }
 0x164   :  { %v1204_v38 = vadd.f32 %v1203_v36, %v1155_v34  ;;  %v1252_v20 = vpop.f32.mrf.mxu3  ;;  %1520 = vmatpush.bf16.msrb.mxu1 %v1995_v9  ;;  %v1886_v34 = vld [vmem:[#allocation3 + $0x50] sm:$0xf]  ;;  %1617 = vmatpush.bf16.msrb.mxu3 %v2199_v13  ;;  %v2290_v36 = vld [vmem:[#allocation3 + $0x1f0] sm:$0xf0]  ;;  %v2260_v13 = vld [vmem:[#allocation3 + $0x100] sm:$0xf0] }
 0x165   :  { %v1887_v63 = vor.u32 %v2239_v10, %v1886_v34  ;;  %v1875_v34 = vor.u32 %v2236_v50, %v1874_v46  ;;  %v1971_v10 = vor.u32 %v2260_v13, %v1970_v59  ;;  %v2066_v50 = vld [vmem:[#allocation3 + $0x1b8] sm:$0xf]  ;;  %v2284_v59 = vld [vmem:[#allocation3 + $0x1c0] sm:$0xf0] }
 0x166   :  { %v1253_v47 = vadd.f32 %v1252_v20, %v1204_v38  ;;  %v2724_v48 = vpop.f32.mrf.mxu0  ;;  %v2091_v20 = vor.u32 %v2290_v36, %v2090_v15  ;;  %v2311_v36 = vld [vmem:[#allocation3 + $0x298] sm:$0xf0] }
 0x167   :  { %v2726_v53 = vpop.f32.mrf.mxu1  ;;  %1472 = vmatpush.bf16.msrb.mxu0 %v1887_v63  ;;  %v2175_v35 = vor.u32 %v2311_v36, %v2174_v8  ;;  %v2257_v63 = vld [vmem:[#allocation3 + $0xe8] sm:$0xf0]  ;;  %v1850_v8 = vld [vmem:[#allocation3 + $0x8] sm:$0xf] }
 0x168   :  { %1521 = vmatpush.bf16.msrb.mxu1 %v1983_v14  ;;  %1569 = vmatpush.bf16.msrb.mxu2 %v2091_v20  ;;  %v1958_v20 = vld [vmem:[#allocation3 + $0xe0] sm:$0xf]  ;;  %v1946_v36 = vld [vmem:[#allocation3 + $0xc8] sm:$0xf] }
 0x169   :  { %1305 = vmatmul.bf16.gmra.mxu0 %v2622_v56  ;;  %1618 = vmatpush.bf16.msrb.mxu3 %v2187_v23  ;;  %v1959_v46 = vor.u32 %v2257_v63, %v1958_v20  ;;  %v2150_v63 = vld [vmem:[#allocation3 + $0x260] sm:$0xf] }
 0x16a   :  { %1354 = vmatmul.bf16.gmra.mxu1 %v2625_v1 }
 0x16b   :  { %v1205_v24 = vpop.f32.mrf.mxu2  ;;  %1473 = vmatpush.bf16.msrb.mxu0 %v1875_v34 }
 0x16c   :  { %v1206_v37 = vadd.f32 %v1205_v24, %v1157_v54  ;;  %v1254_v38 = vpop.f32.mrf.mxu3  ;;  %v2078_v54 = vld [vmem:[#allocation3 + $0x1d0] sm:$0xf]  ;;  %v1688_v24 = vmax.f32 %v1253_v47, 0.0  ;;  %1522 = vmatpush.bf16.msrb.mxu1 %v1971_v10  ;;  %v2067_v10 = vor.u32 %v2284_v59, %v2066_v50  ;;  %v2305_v50 = vld [vmem:[#allocation3 + $0x268] sm:$0xf0] }
 0x16d   :  { %v2079_v15 = vor.u32 %v2287_v12, %v2078_v54  ;;  %1619 = vmatpush.bf16.msrb.mxu3 %v2175_v35  ;;  %v2308_v54 = vld [vmem:[#allocation3 + $0x280] sm:$0xf0] }
 0x16e   :  { %v1255_v61 = vadd.f32 %v1254_v38, %v1206_v37  ;;  %v2730_v9 = vpop.f32.mrf.mxu0  ;;  %v1862_v37 = vld [vmem:[#allocation3 + $0x20] sm:$0xf]  ;;  %v2233_v38 = vld [vmem:[#allocation3 + $0x28] sm:$0xf0] }
 0x16f   :  { %v2732_v3 = vpop.f32.mrf.mxu1  ;;  %1570 = vmatpush.bf16.msrb.mxu2 %v2079_v15  ;;  %v1863_v47 = vor.u32 %v2233_v38, %v1862_v37  ;;  %v2230_v15 = vld [vmem:[#allocation3 + $0x10] sm:$0xf0]  ;;  %v2054_v37 = vld [vmem:[#allocation3 + $0x1a0] sm:$0xf]  ;;  %v2281_v38 = vld [vmem:[#allocation3 + $0x1a8] sm:$0xf0] }
 0x170   :  { %v1691_v14 = vmax.f32 %v1255_v61, 0.0  ;;  %1403 = vmatmul.bf16.gmra.mxu2 %v2632_v49  ;;  %v2162_v61 = vld [vmem:[#allocation3 + $0x278] sm:$0xf]  ;;  %1523 = vmatpush.bf16.msrb.mxu1 %v1959_v46  ;;  %v1851_v34 = vor.u32 %v2230_v15, %v1850_v8  ;;  %v2055_v20 = vor.u32 %v2281_v38, %v2054_v37  ;;  %v2151_v46 = vor.u32 %v2305_v50, %v2150_v63  ;;  %v2302_v8 = vld [vmem:[#allocation3 + $0x250] sm:$0xf0] }
 0x171   :  { %1452 = vmatmul.bf16.gmra.mxu3 %v2635_v58  ;;  %v2163_v12 = vor.u32 %v2308_v54, %v2162_v61  ;;  %1474 = vmatpush.bf16.msrb.mxu0 %v1863_v47  ;;  %v2042_v47 = vld [vmem:[#allocation3 + $0x188] sm:$0xf]  ;;  %v2278_v61 = vld [vmem:[#allocation3 + $0x190] sm:$0xf0] }
 0x172   :  { %v2736_v44 = vpack.c.bf16 %v1691_v14, %v1688_v24  ;;  %v2254_v14 = vld [vmem:[#allocation3 + $0xd0] sm:$0xf0] }
 0x173   :  { %v2738_v23 = vpop.f32.mrf.mxu2  ;;  %1571 = vmatpush.bf16.msrb.mxu2 %v2067_v10  ;;  %1620 = vmatpush.bf16.msrb.mxu3 %v2163_v12  ;;  %v1947_v35 = vor.u32 %v2254_v14, %v1946_v36  ;;  %v2138_v10 = vld [vmem:[#allocation3 + $0x248] sm:$0xf]  ;;  %v2043_v12 = vor.u32 %v2278_v61, %v2042_v47 }
 0x174   :  { %v2740_v13 = vpop.f32.mrf.mxu3  ;;  %v2139_v15 = vor.u32 %v2302_v8, %v2138_v10  ;;  %v2758_v10 = vperm.slane %v2680_v32, 1 }
 0x175   :  { %1524 = vmatpush.bf16.msrb.mxu1 %v1947_v35  ;;  %1475 = vmatpush.bf16.msrb.mxu0 %v1851_v34 }
 0x176   :  { %v1115_v24 = vpop.f32.mrf.mxu0 }
 0x177   :  { %v2742_v58 = vpop.f32.mrf.mxu1  ;;  %1572 = vmatpush.bf16.msrb.mxu2 %v2055_v20  ;;  %1621 = vmatpush.bf16.msrb.mxu3 %v2151_v46 }
 0x179   :  { %1310 = vmatmul.bf16.gmra.mxu0 %v2642_v51 }
 0x17a   :  { %1359 = vmatmul.bf16.gmra.mxu1 %v2645_v0 }
 0x17b   :  { %v2746_v59 = vpop.f32.mrf.mxu2  ;;  %1573 = vmatpush.bf16.msrb.mxu2 %v2043_v12  ;;  %1622 = vmatpush.bf16.msrb.mxu3 %v2139_v15 }
 0x17c   :  { %v2748_v54 = vpop.f32.mrf.mxu3 }
 0x17e   :  { %v1117_v36 = vpop.f32.mrf.mxu0 }
 0x17f   :  { %v1166_v14 = vpop.f32.mrf.mxu1 }
 0x180   :  { %1408 = vmatmul.bf16.gmra.mxu2 %v2652_v40  ;;  %v1118_v40 = vadd.f32 %v1117_v36, %v2684_v22 }
 0x181   :  { %1457 = vmatmul.bf16.gmra.mxu3 %v2655_v45 }
 0x182   :  { %v1167_v51 = vadd.f32 %v1166_v14, %v1118_v40 }
 0x183   :  { %v1213_v35 = vpop.f32.mrf.mxu2 }
 0x184   :  { %v1262_v37 = vpop.f32.mrf.mxu3 }
 0x186   :  { %v1120_v34 = vpop.f32.mrf.mxu0 }
 0x187   :  { %v1169_v38 = vpop.f32.mrf.mxu1  ;;  %v1121_v47 = vadd.f32 %v1120_v34, %v2684_v22  ;;  %v1116_v34 = vadd.f32 %v1115_v24, %v2684_v22 }
 0x189   :  { %1315 = vmatmul.bf16.gmra.mxu0 %v2662_v6  ;;  %v1170_v8 = vadd.f32 %v1169_v38, %v1121_v47  ;;  %v1165_v49 = vadd.f32 %v2742_v58, %v1116_v34  ;;  %v1111_v58 = vadd.f32 %v2724_v48, %v2684_v22 }
 0x18a   :  { %1364 = vmatmul.bf16.gmra.mxu1 %v2665_v11 }
 0x18b   :  { %v1215_v20 = vpop.f32.mrf.mxu2 }
 0x18c   :  { %v1264_v63 = vpop.f32.mrf.mxu3 }
 0x18e   :  { %v1122_v50 = vpop.f32.mrf.mxu0 }
 0x18f   :  { %v1171_v46 = vpop.f32.mrf.mxu1  ;;  %v1123_v15 = vadd.f32 %v1122_v50, %v2684_v22 }
 0x190   :  { %1413 = vmatmul.bf16.gmra.mxu2 %v2672_v26 }
 0x191   :  { %1462 = vmatmul.bf16.gmra.mxu3 %v2674_v30  ;;  %v1172_v30 = vadd.f32 %v1171_v46, %v1123_v15 }
 0x193   :  { %v1218_v61 = vpop.f32.mrf.mxu2 }
 0x194   :  { %v1267_v12 = vpop.f32.mrf.mxu3  ;;  %v1219_v0 = vadd.f32 %v1218_v61, %v1170_v8 }
 0x196   :  { %v1281_v6 = vpop.f32.mrf.mxu0  ;;  %v1268_v38 = vadd.f32 %v1267_v12, %v1219_v0 }
 0x197   :  { %v1282_v11 = vadd.f32 %v1281_v6, %v2758_v10  ;;  %v1330_v45 = vpop.f32.mrf.mxu1  ;;  %v1216_v6 = vadd.f32 %v1215_v20, %v1167_v51 }
 0x198   :  { %v1706_v24 = vmax.f32 %v1268_v38, 0.0 }
 0x199   :  { %v1331_v26 = vadd.f32 %v1330_v45, %v1282_v11  ;;  %1476 = vmatmul.bf16.vlgmr.msrb.gmra.mxu0 %v2522_v27  ;;  %v1113_v27 = vadd.f32 %v2730_v9, %v2684_v22  ;;  %v1214_v11 = vadd.f32 %v1213_v35, %v1165_v49  ;;  %v1265_v51 = vadd.f32 %v1264_v63, %v1216_v6 }
 0x19a   :  { %1525 = vmatmul.bf16.vlgmr.msrb.gmra.mxu1 %v2525_v29  ;;  %v1160_v49 = vadd.f32 %v2726_v53, %v1111_v58 }
 0x19b   :  { %v1220_v32 = vpop.f32.mrf.mxu2 }
 0x19c   :  { %v1221_v47 = vadd.f32 %v1220_v32, %v1172_v30  ;;  %v1269_v50 = vpop.f32.mrf.mxu3  ;;  %v1263_v30 = vadd.f32 %v1262_v37, %v1214_v11  ;;  %v1209_v22 = vadd.f32 %v2738_v23, %v1160_v49 }
 0x19e   :  { %v1270_v1 = vadd.f32 %v1269_v50, %v1221_v47  ;;  %v1283_v56 = vpop.f32.mrf.mxu0  ;;  %v1700_v48 = vmax.f32 %v1263_v30, 0.0 }
 0x19f   :  { %v1284_v36 = vadd.f32 %v1283_v56, %v2758_v10  ;;  %v1332_v45 = vpop.f32.mrf.mxu1  ;;  %v1162_v56 = vadd.f32 %v2732_v3, %v1113_v27 }
 0x1a0   :  { %v1709_v46 = vmax.f32 %v1270_v1, 0.0  ;;  %1574 = vmatmul.bf16.vlgmr.msrb.gmra.mxu2 %v2532_v41  ;;  %v1703_v41 = vmax.f32 %v1265_v51, 0.0 }
 0x1a1   :  { %v1333_v29 = vadd.f32 %v1332_v45, %v1284_v36  ;;  %1623 = vmatmul.bf16.vlgmr.msrb.gmra.mxu3 %v2535_v43  ;;  %v1211_v1 = vadd.f32 %v2746_v59, %v1162_v56  ;;  %v1258_v59 = vadd.f32 %v2740_v13, %v1209_v22 }
 0x1a2   :  { %v1733_v0 = vpack.c.bf16 %v1709_v46, %v1706_v24  ;;  %v1730_v3 = vpack.c.bf16 %v1703_v41, %v1700_v48 }
 0x1a3   :  { %v1379_v40 = vpop.f32.mrf.mxu2  ;;  %v1694_v38 = vmax.f32 %v1258_v59, 0.0 }
 0x1a4   :  { %v1380_v32 = vadd.f32 %v1379_v40, %v1331_v26  ;;  %v1428_v14 = vpop.f32.mrf.mxu3  ;;  %1747 = vmatpush.bf16.xpose.msra.mxu0 %v1733_v0  ;;  %v1260_v26 = vadd.f32 %v2748_v54, %v1211_v1 }
 0x1a6   :  { %v1429_v9 = vadd.f32 %v1428_v14, %v1380_v32  ;;  %v1286_v35 = vpop.f32.mrf.mxu0  ;;  %v1697_v12 = vmax.f32 %v1260_v26, 0.0 }
 0x1a7   :  { %v1287_v43 = vadd.f32 %v1286_v35, %v2758_v10  ;;  %v1335_v20 = vpop.f32.mrf.mxu1 }
 0x1a8   :  { %v1665_v47 = vmax.f32 %v1429_v9, 0.0 }
 0x1a9   :  { %v1336_v63 = vadd.f32 %v1335_v20, %v1287_v43  ;;  %1481 = vmatmul.bf16.gmra.mxu0 %v2542_v55 }
 0x1aa   :  { %1530 = vmatmul.bf16.gmra.mxu1 %v2545_v57  ;;  %v1727_v57 = vpack.c.bf16 %v1697_v12, %v1694_v38 }
 0x1ab   :  { %v1381_v53 = vpop.f32.mrf.mxu2 }
 0x1ac   :  { %v1382_v37 = vadd.f32 %v1381_v53, %v1333_v29  ;;  %v1430_v61 = vpop.f32.mrf.mxu3  ;;  %1748 = vmatpush.bf16.xpose.msra.mxu0 %v1730_v3 }
 0x1ae   :  { %v1431_v8 = vadd.f32 %v1430_v61, %v1382_v37  ;;  %v1288_v15 = vpop.f32.mrf.mxu0 }
 0x1af   :  { %v1289_v23 = vadd.f32 %v1288_v15, %v2758_v10  ;;  %v1337_v34 = vpop.f32.mrf.mxu1 }
 0x1b0   :  { %v1668_v55 = vmax.f32 %v1431_v8, 0.0  ;;  %1579 = vmatmul.bf16.gmra.mxu2 %v2552_v5 }
 0x1b1   :  { %v1338_v54 = vadd.f32 %v1337_v34, %v1289_v23  ;;  %1628 = vmatmul.bf16.gmra.mxu3 %v2555_v7 }
 0x1b2   :  { %v2786_v50 = vpack.c.bf16 %v1668_v55, %v1665_v47 }
 0x1b3   :  { %v1384_v13 = vpop.f32.mrf.mxu2 }
 0x1b4   :  { %v1385_v6 = vadd.f32 %v1384_v13, %v1336_v63  ;;  %v1433_v36 = vpop.f32.mrf.mxu3  ;;  %1749 = vmatpush.bf16.xpose.msra.mxu0 %v1727_v57 }
 0x1b6   :  { %v1434_v45 = vadd.f32 %v1433_v36, %v1385_v6  ;;  %v1291_v27 = vpop.f32.mrf.mxu0  ;;  %v2934_v36 = vld [vmem:[#allocation6_spill] sm:$0xff] }
 0x1b7   :  { %v1292_v11 = vadd.f32 %v1291_v27, %v2758_v10  ;;  %v1340_v24 = vpop.f32.mrf.mxu1  ;;  %v2935_v27 = vld [vmem:[#allocation7_spill] sm:$0xff] }
 0x1b8   :  { %v1671_v56 = vmax.f32 %v1434_v45, 0.0 }
 0x1b9   :  { %v1341_v46 = vadd.f32 %v1340_v24, %v1292_v11  ;;  %1486 = vmatmul.bf16.gmra.mxu0 %v2562_v21 }
 0x1ba   :  { %1535 = vmatmul.bf16.gmra.mxu1 %v2565_v25 }
 0x1bb   :  { %v1386_v5 = vpop.f32.mrf.mxu2 }
 0x1bc   :  { %v1387_v29 = vadd.f32 %v1386_v5, %v1338_v54  ;;  %v1435_v7 = vpop.f32.mrf.mxu3  ;;  %1750 = vmatpush.bf16.xpose.msra.mxu0 %v2736_v44 }
 0x1be   :  { %v1436_v58 = vadd.f32 %v1435_v7, %v1387_v29  ;;  %v1293_v51 = vpop.f32.mrf.mxu0 }
 0x1bf   :  { %v1294_v0 = vadd.f32 %v1293_v51, %v2758_v10  ;;  %v1342_v40 = vpop.f32.mrf.mxu1  ;;  %v2937_v51 = vld [vmem:[#allocation9_spill] sm:$0xff] }
 0x1c0   :  { %v1674_v30 = vmax.f32 %v1436_v58, 0.0  ;;  %1584 = vmatmul.bf16.gmra.mxu2 %v2572_v39  ;;  %v2936_v58 = vld [vmem:[#allocation8_spill] sm:$0xff] }
 0x1c1   :  { %v1343_v32 = vadd.f32 %v1342_v40, %v1294_v0  ;;  %1633 = vmatmul.bf16.gmra.mxu3 %v2575_v42 }
 0x1c2   :  { %v2795_v21 = vpack.c.bf16 %v1674_v30, %v1671_v56 }
 0x1c3   :  { %v1389_v25 = vpop.f32.mrf.mxu2 }
 0x1c4   :  { %v1390_v14 = vadd.f32 %v1389_v25, %v1341_v46  ;;  %v1438_v49 = vpop.f32.mrf.mxu3  ;;  %1751 = vmatpush.bf16.xpose.msra.mxu0 %v2722_v33  ;;  %v2938_v25 = vld [vmem:[#allocation10_spill] sm:$0xff] }
 0x1c6   :  { %v1439_v44 = vadd.f32 %v1438_v49, %v1390_v14  ;;  %v1296_v1 = vpop.f32.mrf.mxu0  ;;  %v2939_v14 = vld [vmem:[#allocation11_spill] sm:$0xff] }
 0x1c7   :  { %v1297_v41 = vadd.f32 %v1296_v1, %v2758_v10  ;;  %v1345_v9 = vpop.f32.mrf.mxu1 }
 0x1c8   :  { %v1677_v63 = vmax.f32 %v1439_v44, 0.0 }
 0x1c9   :  { %v1346_v35 = vadd.f32 %v1345_v9, %v1297_v41  ;;  %1491 = vmatmul.bf16.gmra.mxu0 %v2582_v62  ;;  %v2940_v9 = vld [vmem:[#allocation12_spill] sm:$0xff] }
 0x1ca   :  { %1540 = vmatmul.bf16.gmra.mxu1 %v2585_v4 }
 0x1cb   :  { %v1391_v39 = vpop.f32.mrf.mxu2 }
 0x1cc   :  { %v1392_v43 = vadd.f32 %v1391_v39, %v1343_v32  ;;  %v1440_v42 = vpop.f32.mrf.mxu3  ;;  %1752 = vmatpush.bf16.xpose.msra.mxu0 %v2714_v16 }
 0x1ce   :  { %v1441_v20 = vadd.f32 %v1440_v42, %v1392_v43  ;;  %v1298_v22 = vpop.f32.mrf.mxu0 }
 0x1cf   :  { %v1299_v48 = vadd.f32 %v1298_v22, %v2758_v10  ;;  %v1347_v33 = vpop.f32.mrf.mxu1  ;;  %v2942_v22 = vld [vmem:[#allocation14_spill] sm:$0xff] }
 0x1d0   :  { %v1680_v26 = vmax.f32 %v1441_v20, 0.0  ;;  %1589 = vmatmul.bf16.gmra.mxu2 %v2592_v28 }
 0x1d1   :  { %v1348_v3 = vadd.f32 %v1347_v33, %v1299_v48  ;;  %1638 = vmatmul.bf16.gmra.mxu3 %v2595_v31  ;;  %v2943_v48 = vld [vmem:[#allocation15_spill] sm:$0xff] }
 0x1d2   :  { %v2805_v62 = vpack.c.bf16 %v1680_v26, %v1677_v63 }
 0x1d3   :  { %v1394_v4 = vpop.f32.mrf.mxu2 }
 0x1d4   :  { %v1395_v53 = vadd.f32 %v1394_v4, %v1346_v35  ;;  %v1443_v59 = vpop.f32.mrf.mxu3  ;;  %1753 = vmatpush.bf16.xpose.msra.mxu0 %v2706_v2  ;;  %v2941_v35 = vld [vmem:[#allocation13_spill] sm:$0xff]  ;;  %v2944_v4 = vld [vmem:[#allocation16_spill] sm:$0xff] }
 0x1d6   :  { %v1444_v16 = vadd.f32 %v1443_v59, %v1395_v53  ;;  %v1301_v37 = vpop.f32.mrf.mxu0  ;;  %v2945_v53 = vld [vmem:[#allocation17_spill] sm:$0xff] }
 0x1d7   :  { %v1302_v61 = vadd.f32 %v1301_v37, %v2758_v10  ;;  %v1350_v12 = vpop.f32.mrf.mxu1  ;;  %v2946_v37 = vld [vmem:[#allocation18_spill] sm:$0xff] }
 0x1d8   :  { %v1683_v47 = vmax.f32 %v1444_v16, 0.0 }
 0x1d9   :  { %v1351_v8 = vadd.f32 %v1350_v12, %v1302_v61  ;;  %1496 = vmatmul.bf16.gmra.mxu0 %v2602_v52  ;;  %v2845_v61 = vperm.slane %v2946_v37, 2 }
 0x1da   :  { %1545 = vmatmul.bf16.gmra.mxu1 %v2605_v60 }
 0x1db   :  { %v1396_v28 = vpop.f32.mrf.mxu2 }
 0x1dc   :  { %v1397_v15 = vadd.f32 %v1396_v28, %v1348_v3  ;;  %v1445_v31 = vpop.f32.mrf.mxu3  ;;  %1754 = vmatpush.bf16.xpose.msra.mxu0 %v2698_v18 }
 0x1de   :  { %v1446_v23 = vadd.f32 %v1445_v31, %v1397_v15  ;;  %v1303_v34 = vpop.f32.mrf.mxu0 }
 0x1df   :  { %v1352_v38 = vpop.f32.mrf.mxu1  ;;  %v1304_v60 = vadd.f32 %v1303_v34, %v2758_v10 }
 0x1e0   :  { %v1686_v2 = vmax.f32 %v1446_v23, 0.0  ;;  %1594 = vmatmul.bf16.gmra.mxu2 %v2612_v17 }
 0x1e1   :  { %1643 = vmatmul.bf16.gmra.mxu3 %v2615_v19  ;;  %v1353_v45 = vadd.f32 %v1352_v38, %v1304_v60 }
 0x1e2   :  { %v2814_v55 = vpack.c.bf16 %v1686_v2, %v1683_v47 }
 0x1e3   :  { %v1399_v54 = vpop.f32.mrf.mxu2 }
 0x1e4   :  { %v1400_v52 = vadd.f32 %v1399_v54, %v1351_v8  ;;  %v1448_v57 = vpop.f32.mrf.mxu3 }
 0x1e6   :  { %v1449_v13 = vadd.f32 %v1448_v57, %v1400_v52  ;;  %v2817_v6 = vpop.f32.mrf.mxu0 }
 0x1e7   :  { %v2819_v18 = vpop.f32.mrf.mxu1 }
 0x1e8   :  { %v1689_v29 = vmax.f32 %v1449_v13, 0.0 }
 0x1e9   :  { %1501 = vmatmul.bf16.gmra.mxu0 %v2934_v36 }
 0x1ea   :  { %1550 = vmatmul.bf16.gmra.mxu1 %v2935_v27 }
 0x1eb   :  { %v1401_v17 = vpop.f32.mrf.mxu2 }
 0x1ec   :  { %v1402_v11 = vadd.f32 %v1401_v17, %v1353_v45  ;;  %v1450_v19 = vpop.f32.mrf.mxu3 }
 0x1ee   :  { %v1451_v24 = vadd.f32 %v1450_v19, %v1402_v11  ;;  %v1308_v46 = vpop.f32.mrf.mxu0 }
 0x1ef   :  { %v2823_v5 = vpop.f32.mrf.mxu1 }
 0x1f0   :  { %v1692_v7 = vmax.f32 %v1451_v24, 0.0  ;;  %1599 = vmatmul.bf16.gmra.mxu2 %v2936_v58 }
 0x1f1   :  { %1648 = vmatmul.bf16.gmra.mxu3 %v2937_v51 }
 0x1f2   :  { %v2827_v0 = vpack.c.bf16 %v1692_v7, %v1689_v29  ;;  %v1309_v29 = vadd.f32 %v1308_v46, %v2758_v10 }
 0x1f3   :  { %v2829_v40 = vpop.f32.mrf.mxu2 }
 0x1f4   :  { %v2831_v56 = vpop.f32.mrf.mxu3 }
 0x1f6   :  { %v1311_v30 = vpop.f32.mrf.mxu0 }
 0x1f7   :  { %v1360_v32 = vpop.f32.mrf.mxu1  ;;  %v1312_v2 = vadd.f32 %v1311_v30, %v2758_v10  ;;  %v1307_v30 = vadd.f32 %v2817_v6, %v2758_v10 }
 0x1f9   :  { %1506 = vmatmul.bf16.gmra.mxu0 %v2938_v25  ;;  %v1361_v45 = vadd.f32 %v1360_v32, %v1312_v2  ;;  %v1358_v32 = vadd.f32 %v2823_v5, %v1309_v29 }
 0x1fa   :  { %1555 = vmatmul.bf16.gmra.mxu1 %v2939_v14 }
 0x1fb   :  { %v1406_v49 = vpop.f32.mrf.mxu2 }
 0x1fc   :  { %v2835_v44 = vpop.f32.mrf.mxu3 }
 0x1fe   :  { %v1313_v1 = vpop.f32.mrf.mxu0 }
 0x1ff   :  { %v1362_v41 = vpop.f32.mrf.mxu1  ;;  %v1314_v34 = vadd.f32 %v1313_v1, %v2758_v10 }
 0x200   :  { %1604 = vmatmul.bf16.gmra.mxu2 %v2940_v9 }
 0x201   :  { %1653 = vmatmul.bf16.gmra.mxu3 %v2941_v35  ;;  %v1363_v57 = vadd.f32 %v1362_v41, %v1314_v34 }
 0x203   :  { %v1409_v39 = vpop.f32.mrf.mxu2 }
 0x204   :  { %v1458_v43 = vpop.f32.mrf.mxu3  ;;  %v1410_v7 = vadd.f32 %v1409_v39, %v1361_v45 }
 0x206   :  { %v1316_v42 = vpop.f32.mrf.mxu0  ;;  %v1459_v9 = vadd.f32 %v1458_v43, %v1410_v7 }
 0x207   :  { %v1365_v20 = vpop.f32.mrf.mxu1  ;;  %v1317_v59 = vadd.f32 %v1316_v42, %v2758_v10 }
 0x208   :  { %v1701_v6 = vmax.f32 %v1459_v9, 0.0 }
 0x209   :  { %1511 = vmatmul.bf16.gmra.mxu0 %v2942_v22  ;;  %v1366_v8 = vadd.f32 %v1365_v20, %v1317_v59  ;;  %v1356_v20 = vadd.f32 %v2819_v18, %v1307_v30  ;;  %v1407_v22 = vadd.f32 %v1406_v49, %v1358_v32 }
 0x20a   :  { %1560 = vmatmul.bf16.gmra.mxu1 %v2943_v48 }
 0x20b   :  { %v1411_v33 = vpop.f32.mrf.mxu2 }
 0x20c   :  { %v1460_v63 = vpop.f32.mrf.mxu3  ;;  %v1412_v27 = vadd.f32 %v1411_v33, %v1363_v57 }
 0x20e   :  { %v1318_v26 = vpop.f32.mrf.mxu0  ;;  %v1461_v14 = vadd.f32 %v1460_v63, %v1412_v27 }
 0x20f   :  { %v1367_v3 = vpop.f32.mrf.mxu1  ;;  %v1319_v28 = vadd.f32 %v1318_v26, %v2758_v10  ;;  %v1405_v10 = vadd.f32 %v2829_v40, %v1356_v20 }
 0x210   :  { %1609 = vmatmul.bf16.gmra.mxu2 %v2944_v4  ;;  %v1704_v46 = vmax.f32 %v1461_v14, 0.0 }
 0x211   :  { %1658 = vmatmul.bf16.gmra.mxu3 %v2945_v53  ;;  %v1368_v54 = vadd.f32 %v1367_v3, %v1319_v28  ;;  %v1456_v3 = vadd.f32 %v2835_v44, %v1407_v22  ;;  %v1454_v4 = vadd.f32 %v2831_v56, %v1405_v10 }
 0x212   :  { %v1731_v5 = vpack.c.bf16 %v1704_v46, %v1701_v6 }
 0x213   :  { %v1414_v16 = vpop.f32.mrf.mxu2  ;;  %v1698_v18 = vmax.f32 %v1456_v3, 0.0 }
 0x214   :  { %v1463_v12 = vpop.f32.mrf.mxu3  ;;  %v1415_v38 = vadd.f32 %v1414_v16, %v1366_v8  ;;  %v1695_v8 = vmax.f32 %v1454_v4, 0.0 }
 0x216   :  { %v1477_v15 = vpop.f32.mrf.mxu0  ;;  %v1464_v60 = vadd.f32 %v1463_v12, %v1415_v38 }
 0x217   :  { %v1478_v31 = vadd.f32 %v1477_v15, %v2845_v61  ;;  %v1526_v23 = vpop.f32.mrf.mxu1 }
 0x218   :  { %v1707_v58 = vmax.f32 %v1464_v60, 0.0 }
 0x219   :  { %v1527_v47 = vadd.f32 %v1526_v23, %v1478_v31  ;;  %v1728_v31 = vpack.c.bf16 %v1698_v18, %v1695_v8 }
 0x21b   :  { %v1416_v52 = vpop.f32.mrf.mxu2 }
 0x21c   :  { %v1417_v13 = vadd.f32 %v1416_v52, %v1368_v54  ;;  %v1465_v36 = vpop.f32.mrf.mxu3 }
 0x21e   :  { %v1466_v17 = vadd.f32 %v1465_v36, %v1417_v13  ;;  %v1479_v11 = vpop.f32.mrf.mxu0 }
 0x21f   :  { %v1480_v19 = vadd.f32 %v1479_v11, %v2845_v61  ;;  %v1528_v24 = vpop.f32.mrf.mxu1 }
 0x220   :  { %v1710_v51 = vmax.f32 %v1466_v17, 0.0 }
 0x221   :  { %v1529_v25 = vadd.f32 %v1528_v24, %v1480_v19 }
 0x222   :  { %v1734_v1 = vpack.c.bf16 %v1710_v51, %v1707_v58 }
 0x223   :  { %v1575_v41 = vpop.f32.mrf.mxu2 }
 0x224   :  { %v1576_v35 = vadd.f32 %v1575_v41, %v1527_v47  ;;  %v1624_v42 = vpop.f32.mrf.mxu3  ;;  %1760 = vmatpush.bf16.xpose.msra.mxu1 %v1734_v1 }
 0x226   :  { %v1625_v39 = vadd.f32 %v1624_v42, %v1576_v35  ;;  %v1482_v48 = vpop.f32.mrf.mxu0 }
 0x227   :  { %v1483_v33 = vadd.f32 %v1482_v48, %v2845_v61  ;;  %v1531_v26 = vpop.f32.mrf.mxu1 }
 0x228   :  { %v1666_v28 = vmax.f32 %v1625_v39, 0.0 }
 0x229   :  { %v1532_v63 = vadd.f32 %v1531_v26, %v1483_v33 }
 0x22b   :  { %v1577_v43 = vpop.f32.mrf.mxu2 }
 0x22c   :  { %v1578_v53 = vadd.f32 %v1577_v43, %v1529_v25  ;;  %v1626_v59 = vpop.f32.mrf.mxu3  ;;  %1761 = vmatpush.bf16.xpose.msra.mxu1 %v1731_v5 }
 0x22e   :  { %v1627_v49 = vadd.f32 %v1626_v59, %v1578_v53  ;;  %v1484_v16 = vpop.f32.mrf.mxu0 }
 0x22f   :  { %v1485_v37 = vadd.f32 %v1484_v16, %v2845_v61  ;;  %v1533_v12 = vpop.f32.mrf.mxu1 }
 0x230   :  { %v1669_v40 = vmax.f32 %v1627_v49, 0.0 }
 0x231   :  { %v1534_v15 = vadd.f32 %v1533_v12, %v1485_v37 }
 0x232   :  { %v2862_v23 = vpack.c.bf16 %v1669_v40, %v1666_v28 }
 0x233   :  { %v1580_v44 = vpop.f32.mrf.mxu2 }
 0x234   :  { %v1581_v34 = vadd.f32 %v1580_v44, %v1532_v63  ;;  %v1629_v38 = vpop.f32.mrf.mxu3  ;;  %1762 = vmatpush.bf16.xpose.msra.mxu1 %v1728_v31 }
 0x236   :  { %v1630_v56 = vadd.f32 %v1629_v38, %v1581_v34  ;;  %v1487_v47 = vpop.f32.mrf.mxu0 }
 0x237   :  { %v1488_v2 = vadd.f32 %v1487_v47, %v2845_v61  ;;  %v1536_v54 = vpop.f32.mrf.mxu1 }
 0x238   :  { %v1672_v11 = vmax.f32 %v1630_v56, 0.0 }
 0x239   :  { %v1537_v52 = vadd.f32 %v1536_v54, %v1488_v2 }
 0x23b   :  { %v1582_v57 = vpop.f32.mrf.mxu2 }
 0x23c   :  { %v1583_v60 = vadd.f32 %v1582_v57, %v1534_v15  ;;  %v1631_v13 = vpop.f32.mrf.mxu3  ;;  %1763 = vmatpush.bf16.xpose.msra.mxu1 %v2827_v0 }
 0x23e   :  { %v1632_v36 = vadd.f32 %v1631_v13, %v1583_v60  ;;  %v1489_v45 = vpop.f32.mrf.mxu0 }
 0x23f   :  { %v1490_v27 = vadd.f32 %v1489_v45, %v2845_v61  ;;  %v1538_v17 = vpop.f32.mrf.mxu1 }
 0x240   :  { %v1675_v19 = vmax.f32 %v1632_v36, 0.0 }
 0x241   :  { %v1539_v24 = vadd.f32 %v1538_v17, %v1490_v27 }
 0x242   :  { %v2867_v29 = vpack.c.bf16 %v1675_v19, %v1672_v11 }
 0x243   :  { %v1585_v7 = vpop.f32.mrf.mxu2 }
 0x244   :  { %v1586_v58 = vadd.f32 %v1585_v7, %v1537_v52  ;;  %v1634_v51 = vpop.f32.mrf.mxu3  ;;  %1764 = vmatpush.bf16.xpose.msra.mxu1 %v2814_v55 }
 0x246   :  { %v1635_v25 = vadd.f32 %v1634_v51, %v1586_v58  ;;  %v1492_v30 = vpop.f32.mrf.mxu0 }
 0x247   :  { %v1493_v14 = vadd.f32 %v1492_v30, %v2845_v61  ;;  %v1541_v0 = vpop.f32.mrf.mxu1 }
 0x248   :  { %v1678_v46 = vmax.f32 %v1635_v25, 0.0 }
 0x249   :  { %v1542_v1 = vadd.f32 %v1541_v0, %v1493_v14 }
 0x24b   :  { %v1587_v41 = vpop.f32.mrf.mxu2 }
 0x24c   :  { %v1588_v32 = vadd.f32 %v1587_v41, %v1539_v24  ;;  %v1636_v9 = vpop.f32.mrf.mxu3  ;;  %1765 = vmatpush.bf16.xpose.msra.mxu1 %v2805_v62 }
 0x24e   :  { %v1637_v35 = vadd.f32 %v1636_v9, %v1588_v32  ;;  %v1494_v42 = vpop.f32.mrf.mxu0 }
 0x24f   :  { %v1495_v20 = vadd.f32 %v1494_v42, %v2845_v61  ;;  %v1543_v22 = vpop.f32.mrf.mxu1 }
 0x250   :  { %v1681_v39 = vmax.f32 %v1637_v35, 0.0 }
 0x251   :  { %v1544_v48 = vadd.f32 %v1543_v22, %v1495_v20 }
 0x252   :  { %v2873_v55 = vpack.c.bf16 %v1681_v39, %v1678_v46 }
 0x253   :  { %v1590_v33 = vpop.f32.mrf.mxu2 }
 0x254   :  { %v1591_v26 = vadd.f32 %v1590_v33, %v1542_v1  ;;  %v1639_v10 = vpop.f32.mrf.mxu3  ;;  %1766 = vmatpush.bf16.xpose.msra.mxu1 %v2795_v21 }
 0x256   :  { %v1640_v6 = vadd.f32 %v1639_v10, %v1591_v26  ;;  %v1497_v63 = vpop.f32.mrf.mxu0 }
 0x257   :  { %v1498_v3 = vadd.f32 %v1497_v63, %v2845_v61  ;;  %v1546_v62 = vpop.f32.mrf.mxu1 }
 0x258   :  { %v1684_v37 = vmax.f32 %v1640_v6, 0.0 }
 0x259   :  { %v1547_v5 = vadd.f32 %v1546_v62, %v1498_v3 }
 0x25b   :  { %v1592_v43 = vpop.f32.mrf.mxu2 }
 0x25c   :  { %v1593_v4 = vadd.f32 %v1592_v43, %v1544_v48  ;;  %v1641_v53 = vpop.f32.mrf.mxu3  ;;  %1767 = vmatpush.bf16.xpose.msra.mxu1 %v2786_v50 }
 0x25e   :  { %v1642_v59 = vadd.f32 %v1641_v53, %v1593_v4  ;;  %v1499_v18 = vpop.f32.mrf.mxu0 }
 0x25f   :  { %v1500_v49 = vadd.f32 %v1499_v18, %v2845_v61  ;;  %v1548_v16 = vpop.f32.mrf.mxu1 }
 0x260   :  { %v1687_v12 = vmax.f32 %v1642_v59, 0.0 }
 0x261   :  { %v1549_v8 = vadd.f32 %v1548_v16, %v1500_v49 }
 0x262   :  { %v2879_v21 = vpack.c.bf16 %v1687_v12, %v1684_v37 }
 0x263   :  { %v1595_v28 = vpop.f32.mrf.mxu2 }
 0x264   :  { %v1596_v40 = vadd.f32 %v1595_v28, %v1547_v5  ;;  %v1644_v15 = vpop.f32.mrf.mxu3 }
 0x266   :  { %v1645_v31 = vadd.f32 %v1644_v15, %v1596_v40  ;;  %v1502_v44 = vpop.f32.mrf.mxu0 }
 0x267   :  { %v1551_v34 = vpop.f32.mrf.mxu1  ;;  %v1503_v59 = vadd.f32 %v1502_v44, %v2845_v61 }
 0x268   :  { %v1690_v54 = vmax.f32 %v1645_v31, 0.0 }
 0x269   :  { %v1552_v12 = vadd.f32 %v1551_v34, %v1503_v59 }
 0x26b   :  { %v1597_v38 = vpop.f32.mrf.mxu2 }
 0x26c   :  { %v1598_v56 = vadd.f32 %v1597_v38, %v1549_v8  ;;  %v1646_v47 = vpop.f32.mrf.mxu3 }
 0x26e   :  { %v1647_v50 = vadd.f32 %v1646_v47, %v1598_v56  ;;  %v1504_v2 = vpop.f32.mrf.mxu0 }
 0x26f   :  { %v1553_v57 = vpop.f32.mrf.mxu1  ;;  %v1505_v5 = vadd.f32 %v1504_v2, %v2845_v61 }
 0x270   :  { %v1693_v52 = vmax.f32 %v1647_v50, 0.0 }
 0x271   :  { %v1554_v16 = vadd.f32 %v1553_v57, %v1505_v5 }
 0x272   :  { %v1726_v60 = vpack.c.bf16 %v1693_v52, %v1690_v54 }
 0x273   :  { %v1600_v13 = vpop.f32.mrf.mxu2 }
 0x274   :  { %v1649_v36 = vpop.f32.mrf.mxu3  ;;  %v1601_v40 = vadd.f32 %v1600_v13, %v1552_v12 }
 0x276   :  { %v1507_v45 = vpop.f32.mrf.mxu0  ;;  %v1650_v56 = vadd.f32 %v1649_v36, %v1601_v40 }
 0x277   :  { %v1556_v27 = vpop.f32.mrf.mxu1  ;;  %v1508_v46 = vadd.f32 %v1507_v45, %v2845_v61 }
 0x278   :  { %v1696_v50 = vmax.f32 %v1650_v56, 0.0 }
 0x279   :  { %v1557_v63 = vadd.f32 %v1556_v27, %v1508_v46 }
 0x27b   :  { %v1602_v17 = vpop.f32.mrf.mxu2 }
 0x27c   :  { %v1651_v11 = vpop.f32.mrf.mxu3  ;;  %v1603_v8 = vadd.f32 %v1602_v17, %v1554_v16 }
 0x27e   :  { %v1509_v19 = vpop.f32.mrf.mxu0  ;;  %v1652_v31 = vadd.f32 %v1651_v11, %v1603_v8 }
 0x27f   :  { %v1558_v58 = vpop.f32.mrf.mxu1  ;;  %v1510_v42 = vadd.f32 %v1509_v19, %v2845_v61 }
 0x280   :  { %v1699_v47 = vmax.f32 %v1652_v31, 0.0 }
 0x281   :  { %v1559_v33 = vadd.f32 %v1558_v58, %v1510_v42 }
 0x282   :  { %v1729_v2 = vpack.c.bf16 %v1699_v47, %v1696_v50 }
 0x283   :  { %v1605_v24 = vpop.f32.mrf.mxu2 }
 0x284   :  { %v1654_v7 = vpop.f32.mrf.mxu3  ;;  %v1606_v43 = vadd.f32 %v1605_v24, %v1557_v63 }
 0x286   :  { %v1512_v51 = vpop.f32.mrf.mxu0  ;;  %v1655_v37 = vadd.f32 %v1654_v7, %v1606_v43 }
 0x287   :  { %v1561_v14 = vpop.f32.mrf.mxu1  ;;  %v1513_v0 = vadd.f32 %v1512_v51, %v2845_v61 }
 0x288   :  { %v1702_v15 = vmax.f32 %v1655_v37, 0.0 }
 0x289   :  { %v1562_v9 = vadd.f32 %v1561_v14, %v1513_v0 }
 0x28b   :  { %v1607_v25 = vpop.f32.mrf.mxu2 }
 0x28c   :  { %v1656_v30 = vpop.f32.mrf.mxu3  ;;  %v1608_v3 = vadd.f32 %v1607_v25, %v1559_v33 }
 0x28e   :  { %v1514_v1 = vpop.f32.mrf.mxu0  ;;  %v1657_v18 = vadd.f32 %v1656_v30, %v1608_v3 }
 0x28f   :  { %v1515_v35 = vadd.f32 %v1514_v1, %v2845_v61  ;;  %v1563_v22 = vpop.f32.mrf.mxu1  ;;  %v1736_v61 = vld [vmem:[%s2905_s5] sm:$0x7] }
 0x290   :  { %v1705_v28 = vmax.f32 %v1657_v18, 0.0  ;;  %1740 = vst [vmem:[#allocation1] ss:$9 sm:$0xff] %v1736_v61 }
 0x291   :  { %v1564_v39 = vadd.f32 %v1563_v22, %v1515_v35 }
 0x292   :  { %v1732_v38 = vpack.c.bf16 %v1705_v28, %v1702_v15 }
 0x293   :  { %v1610_v41 = vpop.f32.mrf.mxu2 }
 0x294   :  { %v1659_v32 = vpop.f32.mrf.mxu3  ;;  %v1611_v20 = vadd.f32 %v1610_v41, %v1562_v9 }
 0x296   :  { %v1660_v26 = vadd.f32 %v1659_v32, %v1611_v20 }
 0x297   :  { %v1741_v44 = vld [vmem:[#allocation1] sm:$0xff]  ;;  %v1742_v34 = vld [vmem:[#allocation1 + $0x9] sm:$0xff]  ;;  %v1743_v54 = vld [vmem:[#allocation1 + $0x12] sm:$0xff] }
 0x298   :  { %v1708_v4 = vmax.f32 %v1660_v26, 0.0  ;;  %1755 = vmatmul.bf16.vlgmr.msra.gmra.mxu0 %v1741_v44  ;;  %1768 = vmatmul.bf16.vlgmr.msra.gmra.mxu1 %v1742_v34 }
 0x29b   :  { %v1612_v48 = vpop.f32.mrf.mxu2 }
 0x29c   :  { %v1613_v10 = vadd.f32 %v1612_v48, %v1564_v39  ;;  %v1661_v6 = vpop.f32.mrf.mxu3 }
 0x29e   :  { %v1662_v62 = vadd.f32 %v1661_v6, %v1613_v10 }
 0x2a0   :  { %v1711_v53 = vmax.f32 %v1662_v62, 0.0 }
 0x2a2   :  { %v1735_v49 = vpack.c.bf16 %v1711_v53, %v1708_v4 }
 0x2a4   :  { %1773 = vmatpush.bf16.xpose.msra.mxu2 %v1735_v49 }
 0x2ac   :  { %1774 = vmatpush.bf16.xpose.msra.mxu2 %v1732_v38 }
 0x2b4   :  { %1775 = vmatpush.bf16.xpose.msra.mxu2 %v1729_v2 }
 0x2bc   :  { %1776 = vmatpush.bf16.xpose.msra.mxu2 %v1726_v60  ;;  %v1738_v60 = vstv %s2906_s6 }
 0x2c4   :  { %1777 = vmatpush.bf16.xpose.msra.mxu2 %v2879_v21 }
 0x2cc   :  { %1778 = vmatpush.bf16.xpose.msra.mxu2 %v2873_v55 }
 0x2d4   :  { %1779 = vmatpush.bf16.xpose.msra.mxu2 %v2867_v29 }
 0x2dc   :  { %1780 = vmatpush.bf16.xpose.msra.mxu2 %v2862_v23 }
 0x2e3   :  { %1781 = vmatmul.bf16.vlgmr.msra.gmra.mxu2 %v1743_v54 }
 0x315   :  { %v1756_v52 = vpop.f32.mrf.mxu0  ;;  %v1769_v57 = vpop.f32.mrf.mxu1 }
 0x316   :  { %v1757_v45 = vadd.f32 %v1756_v52, %v1738_v60 }
 0x318   :  { %v1770_v27 = vadd.f32 %v1769_v57, %v1757_v45 }
 0x31d   :  { %v1758_v13 = vpop.f32.mrf.mxu0  ;;  %v1771_v36 = vpop.f32.mrf.mxu1 }
 0x366   :  { %v1782_v17 = vpop.f32.mrf.mxu2 }
 0x367   :  { %v1783_v21 = vadd.f32 %v1782_v17, %v1770_v27 }
 0x369   :  { %1786 = vst [vmem:[%s2907_s7] sm:$0x1] %v1783_v21 }
 0x36e   :  { %v1784_v29 = vpop.f32.mrf.mxu2 }
 0x36f   :  { %1791 = vsyncpa [#allocation4], 1 }

</bundles_post_ra>
